<compile_context>
chip_gen: v7x
topology: tpu7x:2x2x1
jax: 0.10.0
libtpu: 0.0.40
codegen_flags: <defaults>
</compile_context>

<pallas_src>
import functools

import jax
import jax.numpy as jnp
from jax import lax
from jax.experimental import pallas as pl
from jax.experimental.pallas import tpu as pltpu

BN_EPS = 1e-5
LANE = 128


def _round_up(x, m):
    return (x + m - 1) // m * m


def _vmem_limit_bytes():
    # Generation-aware scoped-VMEM request (v5e/v6e: 128 MiB physical, v7x: 64 MiB).
    try:
        cap = int(pltpu.get_tpu_info().vmem_capacity_bytes)
    except Exception:  # pragma: no cover - conservative fallback
        cap = 64 * 1024 * 1024
    return int(min(cap * 3 // 4, 96 * 1024 * 1024))


# ---------------------------------------------------------------------------
# Fused residual-block kernel (one grid step == one batch element)
# ---------------------------------------------------------------------------
def _residual_block_kernel(ph_ref, w1_ref, b1_ref, w2_ref, ws_ref, b2_ref,
                           o_ref, xf_ref, y1_ref, *, stride, hout, wout, cop):
    s = stride
    m = hout * wout

    # Stage the (padded, phase-decomposed) bf16 input slab into f32 VMEM once; the
    # halo window reads below then hit the friendly f32 layout path.
    xf_ref[...] = ph_ref[...].astype(jnp.float32)

    def x_tap(kh, kw):
        # Tap (kh, kw) of the padded input at this block's stride, as (M, Cin) bf16.
        idx = (kh % s) * s + (kw % s)
        a, b = kh // s, kw // s
        t = xf_ref[idx, a:a + hout, b:b + wout, :]
        return t.reshape(m, t.shape[-1]).astype(jnp.bfloat16)

    # ---- conv1 (3x3, stride) + folded BN1 + ReLU: 9 MXU dots into an f32 acc ----
    acc1 = jnp.zeros((m, cop), jnp.float32)
    for kh in range(3):
        for kw in range(3):
            acc1 += jnp.dot(x_tap(kh, kw), w1_ref[kh * 3 + kw],
                            preferred_element_type=jnp.float32)
    y1 = jnp.maximum(acc1 + b1_ref[...], 0.0)

    # Keep y1 in VMEM with a zero halo so conv2's padding=1 taps are plain windows.
    y1_ref[...] = jnp.zeros(y1_ref.shape, y1_ref.dtype)
    y1_ref[1:1 + hout, 1:1 + wout, :] = y1.reshape(hout, wout, cop)

    # ---- conv2 (3x3, stride 1) + folded BN2 + fused shortcut + ReLU ----
    acc2 = jnp.zeros((m, cop), jnp.float32)
    for kh in range(3):
        for kw in range(3):
            t = y1_ref[kh:kh + hout, kw:kw + wout, :]
            acc2 += jnp.dot(t.reshape(m, cop).astype(jnp.bfloat16),
                            w2_ref[kh * 3 + kw],
                            preferred_element_type=jnp.float32)
    # Shortcut (1x1 conv at the block stride, or identity matrix): exactly tap (1,1).
    acc2 += jnp.dot(x_tap(1, 1), ws_ref[...], preferred_element_type=jnp.float32)

    o_ref[...] = jnp.maximum(acc2 + b2_ref[...], 0.0).astype(o_ref.dtype)


# ---------------------------------------------------------------------------
# Host-side glue: phase decomposition, BN folding, padding
# ---------------------------------------------------------------------------
def _make_phases(x_nhwc, stride, hq, wq):
    """Pad spatially (pad=1 plus right zero-fill) and split into stride*stride
    phase slabs so every conv tap becomes an UNSTRIDED static window in-kernel.
    Shape: (N, stride**2, hq, wq, C)."""
    n, h, w, c = x_nhwc.shape
    xp = jnp.pad(x_nhwc, ((0, 0),
                          (1, stride * hq - h - 1),
                          (1, stride * wq - w - 1),
                          (0, 0)))
    ph = [xp[:, a::stride, b::stride, :]
          for a in range(stride) for b in range(stride)]
    return jnp.stack(ph, axis=1)


def _fold_bn(conv_bias, gamma, beta, mean, var):
    scale = gamma / jnp.sqrt(var + BN_EPS)
    return scale, (conv_bias - mean) * scale + beta


def _prep_params(params, cin, cout, cop, stride):
    """Fold BN into weights (scale) and biases; reorder to tap-major matrices,
    pad Cout -> COP (multiple of 128), cast weights to bf16 (biases stay f32)."""
    # conv1 + BN1
    s1, b1 = _fold_bn(params["b1"], params["g1"], params["be1"],
                      params["m1"], params["v1"])
    w1 = jnp.transpose(params["w1"], (2, 3, 1, 0)).reshape(9, cin, cout) * s1
    # conv2 + BN2
    s2, b2 = _fold_bn(params["b2"], params["g2"], params["be2"],
                      params["m2"], params["v2"])
    w2 = jnp.transpose(params["w2"], (2, 3, 1, 0)).reshape(9, cout, cout) * s2
    # shortcut: 1x1 projection conv + BN, or identity as a 1x1 identity matrix
    if stride != 1 or cin != cout:
        ss, bs = _fold_bn(params["bs"], params["gs"], params["bes"],
                          params["ms"], params["vs"])
        ws = params["ws"][:, :, 0, 0].T * ss                  # (Cin, Cout)
        b_out = b2 + bs
    else:
        ws = jnp.eye(cin, dtype=jnp.float32)                  # identity shortcut
        b_out = b2

    pad_o = cop - cout
    w1p = jnp.pad(w1, ((0, 0), (0, 0), (0, pad_o))).astype(jnp.bfloat16)
    w2p = jnp.pad(w2, ((0, 0), (0, pad_o), (0, pad_o))).astype(jnp.bfloat16)
    wsp = jnp.pad(ws, ((0, 0), (0, cop - ws.shape[1]))).astype(jnp.bfloat16)
    b1p = jnp.pad(b1, (0, pad_o)).reshape(1, cop).astype(jnp.float32)
    b2p = jnp.pad(b_out, (0, pad_o)).reshape(1, cop).astype(jnp.float32)
    return w1p, b1p, w2p, wsp, b2p


# ---------------------------------------------------------------------------
# Forward pass (NCHW in, NCHW out — matches the PyTorch module)
# ---------------------------------------------------------------------------
def residual_block_forward(x_nchw, params, stride):
    n, cin, h, w = x_nchw.shape
    cout = params["w1"].shape[0]
    cop = _round_up(cout, LANE)
    hout = (h - 1) // stride + 1
    wout = (w - 1) // stride + 1
    hq, wq = hout + 2, wout + 2
    s2 = stride * stride
    m = hout * wout

    x = jnp.transpose(x_nchw, (0, 2, 3, 1)).astype(jnp.bfloat16)     # NHWC bf16
    phases = _make_phases(x, stride, hq, wq)                          # (N,s2,hq,wq,Cin)
    w1, b1, w2, ws, b2 = _prep_params(params, cin, cout, cop, stride)

    kernel = functools.partial(_residual_block_kernel, stride=stride,
                               hout=hout, wout=wout, cop=cop)

    flops = 2 * n * m * cop * (9 * cin + 9 * cop + cin)
    bytes_accessed = (int(phases.size) * 2
                      + (int(w1.size) + int(w2.size) + int(ws.size)) * 2
                      + (int(b1.size) + int(b2.size)) * 4
                      + n * m * cop * 4)

    out = pl.pallas_call(
        kernel,
        out_shape=jax.ShapeDtypeStruct((n, m, cop), jnp.float32),
        grid=(n,),
        in_specs=[
            pl.BlockSpec((None, s2, hq, wq, cin), lambda b: (b, 0, 0, 0, 0)),
            pl.BlockSpec((9, cin, cop), lambda b: (0, 0, 0)),     # w1 (resident)
            pl.BlockSpec((1, cop), lambda b: (0, 0)),             # bias1
            pl.BlockSpec((9, cop, cop), lambda b: (0, 0, 0)),     # w2 (resident)
            pl.BlockSpec((cin, cop), lambda b: (0, 0)),           # shortcut weights
            pl.BlockSpec((1, cop), lambda b: (0, 0)),             # combined bias
        ],
        out_specs=pl.BlockSpec((None, m, cop), lambda b: (b, 0, 0)),
        scratch_shapes=[
            pltpu.VMEM((s2, hq, wq, cin), jnp.float32),            # f32 input stage
            pltpu.VMEM((hout + 2, wout + 2, cop), jnp.float32),    # y1 + zero halo
        ],
        compiler_params=pltpu.CompilerParams(
            dimension_semantics=("parallel",),
            vmem_limit_bytes=_vmem_limit_bytes(),
        ),
        cost_estimate=pl.CostEstimate(flops=flops, transcendentals=0,
                                      bytes_accessed=bytes_accessed),
    )(phases, w1, b1, w2, ws, b2)

    out = out.reshape(n, hout, wout, cop)[..., :cout]
    return jnp.transpose(out, (0, 3, 1, 2))                           # -> NCHW


# ---------------------------------------------------------------------------
# References for correctness checks
# ---------------------------------------------------------------------------
def _conv_nhwc(x, w_hwio, s, pad):
    return lax.conv_general_dilated(
        x, w_hwio, (s, s), ((pad, pad), (pad, pad)),
        dimension_numbers=("NHWC", "HWIO", "NHWC"),
        precision=lax.Precision.HIGHEST)


def residual_block_matched_ref(x_nchw, params, stride):
    """Uses the SAME bf16-quantized inputs / folded weights as the kernel (f32 conv
    math) -> validates tap / stride / shortcut / fusion logic tightly."""
    n, cin, h, w = x_nchw.shape
    cout = params["w1"].shape[0]
    cop = _round_up(cout, LANE)
    w1, b1, w2, ws, b2 = _prep_params(params, cin, cout, cop, stride)
    x = jnp.transpose(x_nchw, (0, 2, 3, 1)).astype(jnp.bfloat16).astype(jnp.float32)

    w1f = w1.astype(jnp.float32).reshape(3, 3, cin, cop)
    y1 = jnp.maximum(_conv_nhwc(x, w1f, stride, 1) + b1.reshape(1, 1, 1, -1), 0.0)
    y1 = y1.astype(jnp.bfloat16).astype(jnp.float32)          # kernel feeds bf16 to MXU
    w2f = w2.astype(jnp.float32).reshape(3, 3, cop, cop)
    y2 = _conv_nhwc(y1, w2f, 1, 1)
    wsf = ws.astype(jnp.float32).reshape(1, 1, cin, cop)
    sc = _conv_nhwc(x, wsf, stride, 0)
    out = jnp.maximum(y2 + sc + b2.reshape(1, 1, 1, -1), 0.0)[..., :cout]
    return jnp.transpose(out, (0, 3, 1, 2))


def residual_block_reference(x_nchw, params, stride):
    """Fully independent f32 reference (PyTorch-equivalent math, BN unfolded)."""
    x = jnp.transpose(x_nchw, (0, 2, 3, 1)).astype(jnp.float32)
    cin, cout = x.shape[-1], params["w1"].shape[0]

    def conv(inp, w_oihw, bias, s, pad):
        w_hwio = jnp.transpose(w_oihw, (2, 3, 1, 0))
        return _conv_nhwc(inp, w_hwio, s, pad) + bias.reshape(1, 1, 1, -1)

    def bn(y, g, b, mu, v):
        return (y - mu) / jnp.sqrt(v + BN_EPS) * g + b

    y = jnp.maximum(bn(conv(x, params["w1"], params["b1"], stride, 1),
                       params["g1"], params["be1"], params["m1"], params["v1"]), 0.0)
    y = bn(conv(y, params["w2"], params["b2"], 1, 1),
           params["g2"], params["be2"], params["m2"], params["v2"])
    if stride != 1 or cin != cout:
        sc = bn(conv(x, params["ws"], params["bs"], stride, 0),
                params["gs"], params["bes"], params["ms"], params["vs"])
    else:
        sc = x
    return jnp.transpose(jnp.maximum(y + sc, 0.0), (0, 3, 1, 2))


# ---------------------------------------------------------------------------
def make_params(key, cin, cout):
    ks = jax.random.split(key, 10)
    return {
        "w1": 0.1 * jax.random.normal(ks[0], (cout, cin, 3, 3), jnp.float32),
        "b1": 0.1 * jax.random.normal(ks[1], (cout,), jnp.float32),
        "g1": 1.0 + 0.1 * jax.random.normal(ks[2], (cout,), jnp.float32),
        "be1": 0.1 * jax.random.normal(ks[3], (cout,), jnp.float32),
        "m1": 0.1 * jax.random.normal(ks[4], (cout,), jnp.float32),
        "v1": 1.0 + 0.1 * jax.random.uniform(ks[5], (cout,), jnp.float32),
        "w2": 0.1 * jax.random.normal(ks[6], (cout, cout, 3, 3), jnp.float32),
        "b2": 0.1 * jax.random.normal(ks[7], (cout,), jnp.float32),
        "g2": 1.0 + 0.1 * jax.random.normal(ks[8], (cout,), jnp.float32),
        "be2": 0.05 * jnp.ones((cout,), jnp.float32),
        "m2": 0.02 * jnp.ones((cout,), jnp.float32),
        "v2": 1.1 * jnp.ones((cout,), jnp.float32),
        # shortcut 1x1 conv + BN (used only for the projection variant)
        "ws": 0.1 * jax.random.normal(ks[9], (cout, cin, 1, 1), jnp.float32),
        "bs": 0.01 * jnp.ones((cout,), jnp.float32),
        "gs": jnp.ones((cout,), jnp.float32),
        "bes": jnp.zeros((cout,), jnp.float32),
        "ms": 0.03 * jnp.ones((cout,), jnp.float32),
        "vs": 1.2 * jnp.ones((cout,), jnp.float32),
    }


def _check(out, x, params, stride):
    ref_m = residual_block_matched_ref(x, params, stride)
    err_m = float(jnp.max(jnp.abs(out - ref_m)))
    assert err_m < 3e-3, f"matched-precision mismatch: {err_m}"
    ref_f = residual_block_reference(x, params, stride)
    tol = 2.5e-2 * float(jnp.max(jnp.abs(ref_f))) + 2.5e-2   # bf16 storage tolerance
    err_f = float(jnp.max(jnp.abs(out - ref_f)))
    assert err_f < tol, f"f32-reference mismatch: {err_f} (tol {tol})"


if __name__ == "__main__":
    key = jax.random.PRNGKey(0)
    kx1, kp1, kx2, kp2 = jax.random.split(key, 4)
    forward = jax.jit(residual_block_forward, static_argnums=(2,))

    # Case 1: projection shortcut (stride=2, channel change) — fused 1x1 projection.
    N, CIN, COUT, H, W, STRIDE = 2, 8, 16, 16, 16, 2
    x1 = jax.random.normal(kx1, (N, CIN, H, W), jnp.float32)        # NCHW like PyTorch
    params1 = make_params(kp1, CIN, COUT)
    out1 = jax.block_until_ready(forward(x1, params1, STRIDE))
    assert out1.shape == (N, COUT, H // STRIDE, W // STRIDE), out1.shape
    _check(out1, x1, params1, STRIDE)

    # Case 2: identity shortcut (stride=1, equal channels).
    N2, C2, H2, W2 = 2, 16, 8, 8
    x2 = jax.random.normal(kx2, (N2, C2, H2, W2), jnp.float32)
    params2 = make_params(kp2, C2, C2)
    out2 = jax.block_until_ready(forward(x2, params2, 1))
    assert out2.shape == (N2, C2, H2, W2), out2.shape
    _check(out2, x2, params2, 1)

    print("KERNEL_OK")
</pallas_src>

<mosaic_0001>
module attributes {stable_mosaic.version = 11 : i64} {
  func.func @_residual_block_kernel(%arg0: i32, %arg1: memref<1x4x10x10x8xbf16, #tpu.memory_space<vmem>>, %arg2: memref<9x8x128xbf16, #tpu.memory_space<vmem>>, %arg3: memref<1x128xf32, #tpu.memory_space<vmem>>, %arg4: memref<9x128x128xbf16, #tpu.memory_space<vmem>>, %arg5: memref<8x128xbf16, #tpu.memory_space<vmem>>, %arg6: memref<1x128xf32, #tpu.memory_space<vmem>>, %arg7: memref<1x64x128xf32, #tpu.memory_space<vmem>>, %arg8: memref<4x10x10x8xf32, #tpu.memory_space<vmem>>, %arg9: memref<10x10x128xf32, #tpu.memory_space<vmem>>) attributes {dimension_semantics = [#tpu.dimension_semantics<parallel>], iteration_bounds = array<i64: 2>, scalar_prefetch = 0 : i64, scratch_operands = 2 : i64, tpu.core_type = #tpu.core_type<tc>, window_params = [{transform_indices = @transform_0, window_bounds = array<i64: 1, 4, 10, 10, 8>}, {pipeline_mode = #tpu.pipeline_mode<synchronous>, transform_indices = @transform_1, window_bounds = array<i64: 9, 8, 128>}, {pipeline_mode = #tpu.pipeline_mode<synchronous>, transform_indices = @transform_2, window_bounds = array<i64: 1, 128>}, {pipeline_mode = #tpu.pipeline_mode<synchronous>, transform_indices = @transform_3, window_bounds = array<i64: 9, 128, 128>}, {pipeline_mode = #tpu.pipeline_mode<synchronous>, transform_indices = @transform_4, window_bounds = array<i64: 8, 128>}, {pipeline_mode = #tpu.pipeline_mode<synchronous>, transform_indices = @transform_5, window_bounds = array<i64: 1, 128>}, {transform_indices = @transform_6, window_bounds = array<i64: 1, 64, 128>}]} {
    %c0 = arith.constant 0 : index
    %c0_0 = arith.constant 0 : index
    %c0_1 = arith.constant 0 : index
    %c0_2 = arith.constant 0 : index
    %c0_3 = arith.constant 0 : index
    %0 = vector.load %arg1[%c0, %c0_0, %c0_1, %c0_2, %c0_3] : memref<1x4x10x10x8xbf16, #tpu.memory_space<vmem>>, vector<1x4x10x10x8xbf16>
    %1 = vector.shape_cast %0 : vector<1x4x10x10x8xbf16> to vector<4x10x10x8xbf16>
    %2 = arith.extf %1 : vector<4x10x10x8xbf16> to vector<4x10x10x8xf32>
    %c0_4 = arith.constant 0 : index
    %c0_5 = arith.constant 0 : index
    %c0_6 = arith.constant 0 : index
    %c0_7 = arith.constant 0 : index
    %3 = vector.load %arg8[%c0_4, %c0_5, %c0_6, %c0_7] : memref<4x10x10x8xf32, #tpu.memory_space<vmem>>, vector<4x10x10x8xf32>
    tpu.vector_store %arg8[%c0_4, %c0_5, %c0_6, %c0_7], %2 {strides = array<i32>} : memref<4x10x10x8xf32, #tpu.memory_space<vmem>>, vector<4x10x10x8xf32>,
    %cst = arith.constant 0.000000e+00 : f32
    %4 = vector.broadcast %cst : f32 to vector<64x128xf32>
    %c0_8 = arith.constant 0 : index
    %c0_9 = arith.constant 0 : index
    %c0_10 = arith.constant 0 : index
    %c0_11 = arith.constant 0 : index
    %5 = vector.load %arg8[%c0_8, %c0_9, %c0_10, %c0_11] : memref<4x10x10x8xf32, #tpu.memory_space<vmem>>, vector<1x8x8x8xf32>
    %6 = vector.shape_cast %5 : vector<1x8x8x8xf32> to vector<8x8x8xf32>
    %7 = vector.shape_cast %6 : vector<8x8x8xf32> to vector<64x8xf32>
    %8 = arith.truncf %7 : vector<64x8xf32> to vector<64x8xbf16>
    %c0_12 = arith.constant 0 : index
    %c0_13 = arith.constant 0 : index
    %c0_14 = arith.constant 0 : index
    %9 = vector.load %arg2[%c0_12, %c0_13, %c0_14] : memref<9x8x128xbf16, #tpu.memory_space<vmem>>, vector<1x8x128xbf16>
    %10 = vector.shape_cast %9 : vector<1x8x128xbf16> to vector<8x128xbf16>
    %cst_15 = arith.constant dense<0.000000e+00> : vector<64x128xf32>
    %11 = tpu.matmul %8, %10, %cst_15 {dimension_numbers = #tpu.dot_dimension_numbers<[1], [0], [0], [1], [0, 0, 1, 1], [], []>} : vector<64x8xbf16>, vector<8x128xbf16>, vector<64x128xf32> -> vector<64x128xf32>
    %12 = arith.addf %4, %11 : vector<64x128xf32>
    %c1 = arith.constant 1 : index
    %c0_16 = arith.constant 0 : index
    %c0_17 = arith.constant 0 : index
    %c0_18 = arith.constant 0 : index
    %13 = vector.load %arg8[%c1, %c0_16, %c0_17, %c0_18] : memref<4x10x10x8xf32, #tpu.memory_space<vmem>>, vector<1x8x8x8xf32>
    %14 = vector.shape_cast %13 : vector<1x8x8x8xf32> to vector<8x8x8xf32>
    %15 = vector.shape_cast %14 : vector<8x8x8xf32> to vector<64x8xf32>
    %16 = arith.truncf %15 : vector<64x8xf32> to vector<64x8xbf16>
    %c1_19 = arith.constant 1 : index
    %c0_20 = arith.constant 0 : index
    %c0_21 = arith.constant 0 : index
    %17 = vector.load %arg2[%c1_19, %c0_20, %c0_21] : memref<9x8x128xbf16, #tpu.memory_space<vmem>>, vector<1x8x128xbf16>
    %18 = vector.shape_cast %17 : vector<1x8x128xbf16> to vector<8x128xbf16>
    %cst_22 = arith.constant dense<0.000000e+00> : vector<64x128xf32>
    %19 = tpu.matmul %16, %18, %cst_22 {dimension_numbers = #tpu.dot_dimension_numbers<[1], [0], [0], [1], [0, 0, 1, 1], [], []>} : vector<64x8xbf16>, vector<8x128xbf16>, vector<64x128xf32> -> vector<64x128xf32>
    %20 = arith.addf %12, %19 : vector<64x128xf32>
    %c0_23 = arith.constant 0 : index
    %c0_24 = arith.constant 0 : index
    %c1_25 = arith.constant 1 : index
    %c0_26 = arith.constant 0 : index
    %21 = vector.load %arg8[%c0_23, %c0_24, %c1_25, %c0_26] : memref<4x10x10x8xf32, #tpu.memory_space<vmem>>, vector<1x8x8x8xf32>
    %22 = vector.shape_cast %21 : vector<1x8x8x8xf32> to vector<8x8x8xf32>
    %23 = vector.shape_cast %22 : vector<8x8x8xf32> to vector<64x8xf32>
    %24 = arith.truncf %23 : vector<64x8xf32> to vector<64x8xbf16>
    %c2 = arith.constant 2 : index
    %c0_27 = arith.constant 0 : index
    %c0_28 = arith.constant 0 : index
    %25 = vector.load %arg2[%c2, %c0_27, %c0_28] : memref<9x8x128xbf16, #tpu.memory_space<vmem>>, vector<1x8x128xbf16>
    %26 = vector.shape_cast %25 : vector<1x8x128xbf16> to vector<8x128xbf16>
    %cst_29 = arith.constant dense<0.000000e+00> : vector<64x128xf32>
    %27 = tpu.matmul %24, %26, %cst_29 {dimension_numbers = #tpu.dot_dimension_numbers<[1], [0], [0], [1], [0, 0, 1, 1], [], []>} : vector<64x8xbf16>, vector<8x128xbf16>, vector<64x128xf32> -> vector<64x128xf32>
    %28 = arith.addf %20, %27 : vector<64x128xf32>
    %c2_30 = arith.constant 2 : index
    %c0_31 = arith.constant 0 : index
    %c0_32 = arith.constant 0 : index
    %c0_33 = arith.constant 0 : index
    %29 = vector.load %arg8[%c2_30, %c0_31, %c0_32, %c0_33] : memref<4x10x10x8xf32, #tpu.memory_space<vmem>>, vector<1x8x8x8xf32>
    %30 = vector.shape_cast %29 : vector<1x8x8x8xf32> to vector<8x8x8xf32>
    %31 = vector.shape_cast %30 : vector<8x8x8xf32> to vector<64x8xf32>
    %32 = arith.truncf %31 : vector<64x8xf32> to vector<64x8xbf16>
    %c3 = arith.constant 3 : index
    %c0_34 = arith.constant 0 : index
    %c0_35 = arith.constant 0 : index
    %33 = vector.load %arg2[%c3, %c0_34, %c0_35] : memref<9x8x128xbf16, #tpu.memory_space<vmem>>, vector<1x8x128xbf16>
    %34 = vector.shape_cast %33 : vector<1x8x128xbf16> to vector<8x128xbf16>
    %cst_36 = arith.constant dense<0.000000e+00> : vector<64x128xf32>
    %35 = tpu.matmul %32, %34, %cst_36 {dimension_numbers = #tpu.dot_dimension_numbers<[1], [0], [0], [1], [0, 0, 1, 1], [], []>} : vector<64x8xbf16>, vector<8x128xbf16>, vector<64x128xf32> -> vector<64x128xf32>
    %36 = arith.addf %28, %35 : vector<64x128xf32>
    %c3_37 = arith.constant 3 : index
    %c0_38 = arith.constant 0 : index
    %c0_39 = arith.constant 0 : index
    %c0_40 = arith.constant 0 : index
    %37 = vector.load %arg8[%c3_37, %c0_38, %c0_39, %c0_40] : memref<4x10x10x8xf32, #tpu.memory_space<vmem>>, vector<1x8x8x8xf32>
    %38 = vector.shape_cast %37 : vector<1x8x8x8xf32> to vector<8x8x8xf32>
    %39 = vector.shape_cast %38 : vector<8x8x8xf32> to vector<64x8xf32>
    %40 = arith.truncf %39 : vector<64x8xf32> to vector<64x8xbf16>
    %c4 = arith.constant 4 : index
    %c0_41 = arith.constant 0 : index
    %c0_42 = arith.constant 0 : index
    %41 = vector.load %arg2[%c4, %c0_41, %c0_42] : memref<9x8x128xbf16, #tpu.memory_space<vmem>>, vector<1x8x128xbf16>
    %42 = vector.shape_cast %41 : vector<1x8x128xbf16> to vector<8x128xbf16>
    %cst_43 = arith.constant dense<0.000000e+00> : vector<64x128xf32>
    %43 = tpu.matmul %40, %42, %cst_43 {dimension_numbers = #tpu.dot_dimension_numbers<[1], [0], [0], [1], [0, 0, 1, 1], [], []>} : vector<64x8xbf16>, vector<8x128xbf16>, vector<64x128xf32> -> vector<64x128xf32>
    %44 = arith.addf %36, %43 : vector<64x128xf32>
    %c2_44 = arith.constant 2 : index
    %c0_45 = arith.constant 0 : index
    %c1_46 = arith.constant 1 : index
    %c0_47 = arith.constant 0 : index
    %45 = vector.load %arg8[%c2_44, %c0_45, %c1_46, %c0_47] : memref<4x10x10x8xf32, #tpu.memory_space<vmem>>, vector<1x8x8x8xf32>
    %46 = vector.shape_cast %45 : vector<1x8x8x8xf32> to vector<8x8x8xf32>
    %47 = vector.shape_cast %46 : vector<8x8x8xf32> to vector<64x8xf32>
    %48 = arith.truncf %47 : vector<64x8xf32> to vector<64x8xbf16>
    %c5 = arith.constant 5 : index
    %c0_48 = arith.constant 0 : index
    %c0_49 = arith.constant 0 : index
    %49 = vector.load %arg2[%c5, %c0_48, %c0_49] : memref<9x8x128xbf16, #tpu.memory_space<vmem>>, vector<1x8x128xbf16>
    %50 = vector.shape_cast %49 : vector<1x8x128xbf16> to vector<8x128xbf16>
    %cst_50 = arith.constant dense<0.000000e+00> : vector<64x128xf32>
    %51 = tpu.matmul %48, %50, %cst_50 {dimension_numbers = #tpu.dot_dimension_numbers<[1], [0], [0], [1], [0, 0, 1, 1], [], []>} : vector<64x8xbf16>, vector<8x128xbf16>, vector<64x128xf32> -> vector<64x128xf32>
    %52 = arith.addf %44, %51 : vector<64x128xf32>
    %c0_51 = arith.constant 0 : index
    %c1_52 = arith.constant 1 : index
    %c0_53 = arith.constant 0 : index
    %c0_54 = arith.constant 0 : index
    %53 = vector.load %arg8[%c0_51, %c1_52, %c0_53, %c0_54] : memref<4x10x10x8xf32, #tpu.memory_space<vmem>>, vector<1x8x8x8xf32>
    %54 = vector.shape_cast %53 : vector<1x8x8x8xf32> to vector<8x8x8xf32>
    %55 = vector.shape_cast %54 : vector<8x8x8xf32> to vector<64x8xf32>
    %56 = arith.truncf %55 : vector<64x8xf32> to vector<64x8xbf16>
    %c6 = arith.constant 6 : index
    %c0_55 = arith.constant 0 : index
    %c0_56 = arith.constant 0 : index
    %57 = vector.load %arg2[%c6, %c0_55, %c0_56] : memref<9x8x128xbf16, #tpu.memory_space<vmem>>, vector<1x8x128xbf16>
    %58 = vector.shape_cast %57 : vector<1x8x128xbf16> to vector<8x128xbf16>
    %cst_57 = arith.constant dense<0.000000e+00> : vector<64x128xf32>
    %59 = tpu.matmul %56, %58, %cst_57 {dimension_numbers = #tpu.dot_dimension_numbers<[1], [0], [0], [1], [0, 0, 1, 1], [], []>} : vector<64x8xbf16>, vector<8x128xbf16>, vector<64x128xf32> -> vector<64x128xf32>
    %60 = arith.addf %52, %59 : vector<64x128xf32>
    %c1_58 = arith.constant 1 : index
    %c1_59 = arith.constant 1 : index
    %c0_60 = arith.constant 0 : index
    %c0_61 = arith.constant 0 : index
    %61 = vector.load %arg8[%c1_58, %c1_59, %c0_60, %c0_61] : memref<4x10x10x8xf32, #tpu.memory_space<vmem>>, vector<1x8x8x8xf32>
    %62 = vector.shape_cast %61 : vector<1x8x8x8xf32> to vector<8x8x8xf32>
    %63 = vector.shape_cast %62 : vector<8x8x8xf32> to vector<64x8xf32>
    %64 = arith.truncf %63 : vector<64x8xf32> to vector<64x8xbf16>
    %c7 = arith.constant 7 : index
    %c0_62 = arith.constant 0 : index
    %c0_63 = arith.constant 0 : index
    %65 = vector.load %arg2[%c7, %c0_62, %c0_63] : memref<9x8x128xbf16, #tpu.memory_space<vmem>>, vector<1x8x128xbf16>
    %66 = vector.shape_cast %65 : vector<1x8x128xbf16> to vector<8x128xbf16>
    %cst_64 = arith.constant dense<0.000000e+00> : vector<64x128xf32>
    %67 = tpu.matmul %64, %66, %cst_64 {dimension_numbers = #tpu.dot_dimension_numbers<[1], [0], [0], [1], [0, 0, 1, 1], [], []>} : vector<64x8xbf16>, vector<8x128xbf16>, vector<64x128xf32> -> vector<64x128xf32>
    %68 = arith.addf %60, %67 : vector<64x128xf32>
    %c0_65 = arith.constant 0 : index
    %c1_66 = arith.constant 1 : index
    %c1_67 = arith.constant 1 : index
    %c0_68 = arith.constant 0 : index
    %69 = vector.load %arg8[%c0_65, %c1_66, %c1_67, %c0_68] : memref<4x10x10x8xf32, #tpu.memory_space<vmem>>, vector<1x8x8x8xf32>
    %70 = vector.shape_cast %69 : vector<1x8x8x8xf32> to vector<8x8x8xf32>
    %71 = vector.shape_cast %70 : vector<8x8x8xf32> to vector<64x8xf32>
    %72 = arith.truncf %71 : vector<64x8xf32> to vector<64x8xbf16>
    %c8 = arith.constant 8 : index
    %c0_69 = arith.constant 0 : index
    %c0_70 = arith.constant 0 : index
    %73 = vector.load %arg2[%c8, %c0_69, %c0_70] : memref<9x8x128xbf16, #tpu.memory_space<vmem>>, vector<1x8x128xbf16>
    %74 = vector.shape_cast %73 : vector<1x8x128xbf16> to vector<8x128xbf16>
    %cst_71 = arith.constant dense<0.000000e+00> : vector<64x128xf32>
    %75 = tpu.matmul %72, %74, %cst_71 {dimension_numbers = #tpu.dot_dimension_numbers<[1], [0], [0], [1], [0, 0, 1, 1], [], []>} : vector<64x8xbf16>, vector<8x128xbf16>, vector<64x128xf32> -> vector<64x128xf32>
    %76 = arith.addf %68, %75 : vector<64x128xf32>
    %c0_72 = arith.constant 0 : index
    %c0_73 = arith.constant 0 : index
    %77 = vector.load %arg3[%c0_72, %c0_73] : memref<1x128xf32, #tpu.memory_space<vmem>>, vector<1x128xf32>
    %78 = vector.broadcast %77 : vector<1x128xf32> to vector<64x128xf32>
    %79 = arith.addf %76, %78 : vector<64x128xf32>
    %cst_74 = arith.constant 0.000000e+00 : f32
    %80 = vector.broadcast %cst_74 : f32 to vector<64x128xf32>
    %81 = arith.maximumf %79, %80 : vector<64x128xf32>
    %cst_75 = arith.constant 0.000000e+00 : f32
    %82 = vector.broadcast %cst_75 : f32 to vector<10x10x128xf32>
    %c0_76 = arith.constant 0 : index
    %c0_77 = arith.constant 0 : index
    %c0_78 = arith.constant 0 : index
    %83 = vector.load %arg9[%c0_76, %c0_77, %c0_78] : memref<10x10x128xf32, #tpu.memory_space<vmem>>, vector<10x10x128xf32>
    tpu.vector_store %arg9[%c0_76, %c0_77, %c0_78], %82 {strides = array<i32>} : memref<10x10x128xf32, #tpu.memory_space<vmem>>, vector<10x10x128xf32>,
    %84 = vector.shape_cast %81 : vector<64x128xf32> to vector<8x8x128xf32>
    %c1_79 = arith.constant 1 : index
    %c1_80 = arith.constant 1 : index
    %c0_81 = arith.constant 0 : index
    %85 = vector.load %arg9[%c1_79, %c1_80, %c0_81] : memref<10x10x128xf32, #tpu.memory_space<vmem>>, vector<8x8x128xf32>
    tpu.vector_store %arg9[%c1_79, %c1_80, %c0_81], %84 {strides = array<i32>} : memref<10x10x128xf32, #tpu.memory_space<vmem>>, vector<8x8x128xf32>,
    %cst_82 = arith.constant 0.000000e+00 : f32
    %86 = vector.broadcast %cst_82 : f32 to vector<64x128xf32>
    %c0_83 = arith.constant 0 : index
    %c0_84 = arith.constant 0 : index
    %c0_85 = arith.constant 0 : index
    %87 = vector.load %arg9[%c0_83, %c0_84, %c0_85] : memref<10x10x128xf32, #tpu.memory_space<vmem>>, vector<8x8x128xf32>
    %88 = vector.shape_cast %87 : vector<8x8x128xf32> to vector<64x128xf32>
    %89 = arith.truncf %88 : vector<64x128xf32> to vector<64x128xbf16>
    %c0_86 = arith.constant 0 : index
    %c0_87 = arith.constant 0 : index
    %c0_88 = arith.constant 0 : index
    %90 = vector.load %arg4[%c0_86, %c0_87, %c0_88] : memref<9x128x128xbf16, #tpu.memory_space<vmem>>, vector<1x128x128xbf16>
    %91 = vector.shape_cast %90 : vector<1x128x128xbf16> to vector<128x128xbf16>
    %cst_89 = arith.constant dense<0.000000e+00> : vector<64x128xf32>
    %92 = tpu.matmul %89, %91, %cst_89 {dimension_numbers = #tpu.dot_dimension_numbers<[1], [0], [0], [1], [0, 0, 1, 1], [], []>} : vector<64x128xbf16>, vector<128x128xbf16>, vector<64x128xf32> -> vector<64x128xf32>
    %93 = arith.addf %86, %92 : vector<64x128xf32>
    %c0_90 = arith.constant 0 : index
    %c1_91 = arith.constant 1 : index
    %c0_92 = arith.constant 0 : index
    %94 = vector.load %arg9[%c0_90, %c1_91, %c0_92] : memref<10x10x128xf32, #tpu.memory_space<vmem>>, vector<8x8x128xf32>
    %95 = vector.shape_cast %94 : vector<8x8x128xf32> to vector<64x128xf32>
    %96 = arith.truncf %95 : vector<64x128xf32> to vector<64x128xbf16>
    %c1_93 = arith.constant 1 : index
    %c0_94 = arith.constant 0 : index
    %c0_95 = arith.constant 0 : index
    %97 = vector.load %arg4[%c1_93, %c0_94, %c0_95] : memref<9x128x128xbf16, #tpu.memory_space<vmem>>, vector<1x128x128xbf16>
    %98 = vector.shape_cast %97 : vector<1x128x128xbf16> to vector<128x128xbf16>
    %cst_96 = arith.constant dense<0.000000e+00> : vector<64x128xf32>
    %99 = tpu.matmul %96, %98, %cst_96 {dimension_numbers = #tpu.dot_dimension_numbers<[1], [0], [0], [1], [0, 0, 1, 1], [], []>} : vector<64x128xbf16>, vector<128x128xbf16>, vector<64x128xf32> -> vector<64x128xf32>
    %100 = arith.addf %93, %99 : vector<64x128xf32>
    %c0_97 = arith.constant 0 : index
    %c2_98 = arith.constant 2 : index
    %c0_99 = arith.constant 0 : index
    %101 = vector.load %arg9[%c0_97, %c2_98, %c0_99] : memref<10x10x128xf32, #tpu.memory_space<vmem>>, vector<8x8x128xf32>
    %102 = vector.shape_cast %101 : vector<8x8x128xf32> to vector<64x128xf32>
    %103 = arith.truncf %102 : vector<64x128xf32> to vector<64x128xbf16>
    %c2_100 = arith.constant 2 : index
    %c0_101 = arith.constant 0 : index
    %c0_102 = arith.constant 0 : index
    %104 = vector.load %arg4[%c2_100, %c0_101, %c0_102] : memref<9x128x128xbf16, #tpu.memory_space<vmem>>, vector<1x128x128xbf16>
    %105 = vector.shape_cast %104 : vector<1x128x128xbf16> to vector<128x128xbf16>
    %cst_103 = arith.constant dense<0.000000e+00> : vector<64x128xf32>
    %106 = tpu.matmul %103, %105, %cst_103 {dimension_numbers = #tpu.dot_dimension_numbers<[1], [0], [0], [1], [0, 0, 1, 1], [], []>} : vector<64x128xbf16>, vector<128x128xbf16>, vector<64x128xf32> -> vector<64x128xf32>
    %107 = arith.addf %100, %106 : vector<64x128xf32>
    %c1_104 = arith.constant 1 : index
    %c0_105 = arith.constant 0 : index
    %c0_106 = arith.constant 0 : index
    %108 = vector.load %arg9[%c1_104, %c0_105, %c0_106] : memref<10x10x128xf32, #tpu.memory_space<vmem>>, vector<8x8x128xf32>
    %109 = vector.shape_cast %108 : vector<8x8x128xf32> to vector<64x128xf32>
    %110 = arith.truncf %109 : vector<64x128xf32> to vector<64x128xbf16>
    %c3_107 = arith.constant 3 : index
    %c0_108 = arith.constant 0 : index
    %c0_109 = arith.constant 0 : index
    %111 = vector.load %arg4[%c3_107, %c0_108, %c0_109] : memref<9x128x128xbf16, #tpu.memory_space<vmem>>, vector<1x128x128xbf16>
    %112 = vector.shape_cast %111 : vector<1x128x128xbf16> to vector<128x128xbf16>
    %cst_110 = arith.constant dense<0.000000e+00> : vector<64x128xf32>
    %113 = tpu.matmul %110, %112, %cst_110 {dimension_numbers = #tpu.dot_dimension_numbers<[1], [0], [0], [1], [0, 0, 1, 1], [], []>} : vector<64x128xbf16>, vector<128x128xbf16>, vector<64x128xf32> -> vector<64x128xf32>
    %114 = arith.addf %107, %113 : vector<64x128xf32>
    %c1_111 = arith.constant 1 : index
    %c1_112 = arith.constant 1 : index
    %c0_113 = arith.constant 0 : index
    %115 = vector.load %arg9[%c1_111, %c1_112, %c0_113] : memref<10x10x128xf32, #tpu.memory_space<vmem>>, vector<8x8x128xf32>
    %116 = vector.shape_cast %115 : vector<8x8x128xf32> to vector<64x128xf32>
    %117 = arith.truncf %116 : vector<64x128xf32> to vector<64x128xbf16>
    %c4_114 = arith.constant 4 : index
    %c0_115 = arith.constant 0 : index
    %c0_116 = arith.constant 0 : index
    %118 = vector.load %arg4[%c4_114, %c0_115, %c0_116] : memref<9x128x128xbf16, #tpu.memory_space<vmem>>, vector<1x128x128xbf16>
    %119 = vector.shape_cast %118 : vector<1x128x128xbf16> to vector<128x128xbf16>
    %cst_117 = arith.constant dense<0.000000e+00> : vector<64x128xf32>
    %120 = tpu.matmul %117, %119, %cst_117 {dimension_numbers = #tpu.dot_dimension_numbers<[1], [0], [0], [1], [0, 0, 1, 1], [], []>} : vector<64x128xbf16>, vector<128x128xbf16>, vector<64x128xf32> -> vector<64x128xf32>
    %121 = arith.addf %114, %120 : vector<64x128xf32>
    %c1_118 = arith.constant 1 : index
    %c2_119 = arith.constant 2 : index
    %c0_120 = arith.constant 0 : index
    %122 = vector.load %arg9[%c1_118, %c2_119, %c0_120] : memref<10x10x128xf32, #tpu.memory_space<vmem>>, vector<8x8x128xf32>
    %123 = vector.shape_cast %122 : vector<8x8x128xf32> to vector<64x128xf32>
    %124 = arith.truncf %123 : vector<64x128xf32> to vector<64x128xbf16>
    %c5_121 = arith.constant 5 : index
    %c0_122 = arith.constant 0 : index
    %c0_123 = arith.constant 0 : index
    %125 = vector.load %arg4[%c5_121, %c0_122, %c0_123] : memref<9x128x128xbf16, #tpu.memory_space<vmem>>, vector<1x128x128xbf16>
    %126 = vector.shape_cast %125 : vector<1x128x128xbf16> to vector<128x128xbf16>
    %cst_124 = arith.constant dense<0.000000e+00> : vector<64x128xf32>
    %127 = tpu.matmul %124, %126, %cst_124 {dimension_numbers = #tpu.dot_dimension_numbers<[1], [0], [0], [1], [0, 0, 1, 1], [], []>} : vector<64x128xbf16>, vector<128x128xbf16>, vector<64x128xf32> -> vector<64x128xf32>
    %128 = arith.addf %121, %127 : vector<64x128xf32>
    %c2_125 = arith.constant 2 : index
    %c0_126 = arith.constant 0 : index
    %c0_127 = arith.constant 0 : index
    %129 = vector.load %arg9[%c2_125, %c0_126, %c0_127] : memref<10x10x128xf32, #tpu.memory_space<vmem>>, vector<8x8x128xf32>
    %130 = vector.shape_cast %129 : vector<8x8x128xf32> to vector<64x128xf32>
    %131 = arith.truncf %130 : vector<64x128xf32> to vector<64x128xbf16>
    %c6_128 = arith.constant 6 : index
    %c0_129 = arith.constant 0 : index
    %c0_130 = arith.constant 0 : index
    %132 = vector.load %arg4[%c6_128, %c0_129, %c0_130] : memref<9x128x128xbf16, #tpu.memory_space<vmem>>, vector<1x128x128xbf16>
    %133 = vector.shape_cast %132 : vector<1x128x128xbf16> to vector<128x128xbf16>
    %cst_131 = arith.constant dense<0.000000e+00> : vector<64x128xf32>
    %134 = tpu.matmul %131, %133, %cst_131 {dimension_numbers = #tpu.dot_dimension_numbers<[1], [0], [0], [1], [0, 0, 1, 1], [], []>} : vector<64x128xbf16>, vector<128x128xbf16>, vector<64x128xf32> -> vector<64x128xf32>
    %135 = arith.addf %128, %134 : vector<64x128xf32>
    %c2_132 = arith.constant 2 : index
    %c1_133 = arith.constant 1 : index
    %c0_134 = arith.constant 0 : index
    %136 = vector.load %arg9[%c2_132, %c1_133, %c0_134] : memref<10x10x128xf32, #tpu.memory_space<vmem>>, vector<8x8x128xf32>
    %137 = vector.shape_cast %136 : vector<8x8x128xf32> to vector<64x128xf32>
    %138 = arith.truncf %137 : vector<64x128xf32> to vector<64x128xbf16>
    %c7_135 = arith.constant 7 : index
    %c0_136 = arith.constant 0 : index
    %c0_137 = arith.constant 0 : index
    %139 = vector.load %arg4[%c7_135, %c0_136, %c0_137] : memref<9x128x128xbf16, #tpu.memory_space<vmem>>, vector<1x128x128xbf16>
    %140 = vector.shape_cast %139 : vector<1x128x128xbf16> to vector<128x128xbf16>
    %cst_138 = arith.constant dense<0.000000e+00> : vector<64x128xf32>
    %141 = tpu.matmul %138, %140, %cst_138 {dimension_numbers = #tpu.dot_dimension_numbers<[1], [0], [0], [1], [0, 0, 1, 1], [], []>} : vector<64x128xbf16>, vector<128x128xbf16>, vector<64x128xf32> -> vector<64x128xf32>
    %142 = arith.addf %135, %141 : vector<64x128xf32>
    %c2_139 = arith.constant 2 : index
    %c2_140 = arith.constant 2 : index
    %c0_141 = arith.constant 0 : index
    %143 = vector.load %arg9[%c2_139, %c2_140, %c0_141] : memref<10x10x128xf32, #tpu.memory_space<vmem>>, vector<8x8x128xf32>
    %144 = vector.shape_cast %143 : vector<8x8x128xf32> to vector<64x128xf32>
    %145 = arith.truncf %144 : vector<64x128xf32> to vector<64x128xbf16>
    %c8_142 = arith.constant 8 : index
    %c0_143 = arith.constant 0 : index
    %c0_144 = arith.constant 0 : index
    %146 = vector.load %arg4[%c8_142, %c0_143, %c0_144] : memref<9x128x128xbf16, #tpu.memory_space<vmem>>, vector<1x128x128xbf16>
    %147 = vector.shape_cast %146 : vector<1x128x128xbf16> to vector<128x128xbf16>
    %cst_145 = arith.constant dense<0.000000e+00> : vector<64x128xf32>
    %148 = tpu.matmul %145, %147, %cst_145 {dimension_numbers = #tpu.dot_dimension_numbers<[1], [0], [0], [1], [0, 0, 1, 1], [], []>} : vector<64x128xbf16>, vector<128x128xbf16>, vector<64x128xf32> -> vector<64x128xf32>
    %149 = arith.addf %142, %148 : vector<64x128xf32>
    %c3_146 = arith.constant 3 : index
    %c0_147 = arith.constant 0 : index
    %c0_148 = arith.constant 0 : index
    %c0_149 = arith.constant 0 : index
    %150 = vector.load %arg8[%c3_146, %c0_147, %c0_148, %c0_149] : memref<4x10x10x8xf32, #tpu.memory_space<vmem>>, vector<1x8x8x8xf32>
    %151 = vector.shape_cast %150 : vector<1x8x8x8xf32> to vector<8x8x8xf32>
    %152 = vector.shape_cast %151 : vector<8x8x8xf32> to vector<64x8xf32>
    %153 = arith.truncf %152 : vector<64x8xf32> to vector<64x8xbf16>
    %c0_150 = arith.constant 0 : index
    %c0_151 = arith.constant 0 : index
    %154 = vector.load %arg5[%c0_150, %c0_151] : memref<8x128xbf16, #tpu.memory_space<vmem>>, vector<8x128xbf16>
    %cst_152 = arith.constant dense<0.000000e+00> : vector<64x128xf32>
    %155 = tpu.matmul %153, %154, %cst_152 {dimension_numbers = #tpu.dot_dimension_numbers<[1], [0], [0], [1], [0, 0, 1, 1], [], []>} : vector<64x8xbf16>, vector<8x128xbf16>, vector<64x128xf32> -> vector<64x128xf32>
    %156 = arith.addf %149, %155 : vector<64x128xf32>
    %c0_153 = arith.constant 0 : index
    %c0_154 = arith.constant 0 : index
    %157 = vector.load %arg6[%c0_153, %c0_154] : memref<1x128xf32, #tpu.memory_space<vmem>>, vector<1x128xf32>
    %158 = vector.broadcast %157 : vector<1x128xf32> to vector<64x128xf32>
    %159 = arith.addf %156, %158 : vector<64x128xf32>
    %cst_155 = arith.constant 0.000000e+00 : f32
    %160 = vector.broadcast %cst_155 : f32 to vector<64x128xf32>
    %161 = arith.maximumf %159, %160 : vector<64x128xf32>
    %c0_156 = arith.constant 0 : index
    %c0_157 = arith.constant 0 : index
    %c0_158 = arith.constant 0 : index
    %162 = vector.load %arg7[%c0_156, %c0_157, %c0_158] : memref<1x64x128xf32, #tpu.memory_space<vmem>>, vector<1x64x128xf32>
    %163 = vector.shape_cast %162 : vector<1x64x128xf32> to vector<64x128xf32>
    %164 = vector.shape_cast %161 : vector<64x128xf32> to vector<1x64x128xf32>
    tpu.vector_store %arg7[%c0_156, %c0_157, %c0_158], %164 {strides = array<i32>} : memref<1x64x128xf32, #tpu.memory_space<vmem>>, vector<1x64x128xf32>,
    return
  }
  func.func @transform_0(%arg0: i32) -> (i32, i32, i32, i32, i32) {
    %c0_i32 = arith.constant 0 : i32
    %c0_i32_0 = arith.constant 0 : i32
    %c0_i32_1 = arith.constant 0 : i32
    %c0_i32_2 = arith.constant 0 : i32
    %c0_i32_3 = arith.constant 0 : i32
    return %arg0, %c0_i32, %c0_i32_0, %c0_i32_1, %c0_i32_2 : i32, i32, i32, i32, i32
  }
  func.func @transform_1(%arg0: i32) -> (i32, i32, i32) {
    %c0_i32 = arith.constant 0 : i32
    %c0_i32_0 = arith.constant 0 : i32
    %c0_i32_1 = arith.constant 0 : i32
    %c0_i32_2 = arith.constant 0 : i32
    return %c0_i32, %c0_i32_0, %c0_i32_1 : i32, i32, i32
  }
  func.func @transform_2(%arg0: i32) -> (i32, i32) {
    %c0_i32 = arith.constant 0 : i32
    %c0_i32_0 = arith.constant 0 : i32
    %c0_i32_1 = arith.constant 0 : i32
    return %c0_i32, %c0_i32_0 : i32, i32
  }
  func.func @transform_3(%arg0: i32) -> (i32, i32, i32) {
    %c0_i32 = arith.constant 0 : i32
    %c0_i32_0 = arith.constant 0 : i32
    %c0_i32_1 = arith.constant 0 : i32
    %c0_i32_2 = arith.constant 0 : i32
    return %c0_i32, %c0_i32_0, %c0_i32_1 : i32, i32, i32
  }
  func.func @transform_4(%arg0: i32) -> (i32, i32) {
    %c0_i32 = arith.constant 0 : i32
    %c0_i32_0 = arith.constant 0 : i32
    %c0_i32_1 = arith.constant 0 : i32
    return %c0_i32, %c0_i32_0 : i32, i32
  }
  func.func @transform_5(%arg0: i32) -> (i32, i32) {
    %c0_i32 = arith.constant 0 : i32
    %c0_i32_0 = arith.constant 0 : i32
    %c0_i32_1 = arith.constant 0 : i32
    return %c0_i32, %c0_i32_0 : i32, i32
  }
  func.func @transform_6(%arg0: i32) -> (i32, i32, i32) {
    %c0_i32 = arith.constant 0 : i32
    %c0_i32_0 = arith.constant 0 : i32
    %c0_i32_1 = arith.constant 0 : i32
    return %arg0, %c0_i32, %c0_i32_0 : i32, i32, i32
  }
}

</mosaic_0001>

<bundles_post_ra>
// kernel: residual_block_forward.1
= control target key start
LH: loop header
LB: loop body
LE: loop exit
PB: predicated region body
PF: predicated region fallthrough
CT: control target
= control target key end

     0   :  { %s3982_s21 = smov 0   ;;  %s4691_s0 = inlined_call_operand.vmem [shape: bf16[2,4,10,10,8], index: 0, kind: input, shape index: {}]   ;;  %s4692_s1 = inlined_call_operand.vmem [shape: bf16[9,8,128], index: 1, kind: input, shape index: {}]   ;;  %s4693_s2 = inlined_call_operand.vmem [shape: f32[1,128], index: 2, kind: input, shape index: {}]   ;;  %s4694_s3 = inlined_call_operand.vmem [shape: bf16[9,128,128], index: 3, kind: input, shape index: {}]   ;;  %s4695_s4 = inlined_call_operand.vmem [shape: bf16[8,128], index: 4, kind: input, shape index: {}]   ;;  %s4696_s5 = inlined_call_operand.vmem [shape: f32[1,128], index: 5, kind: input, shape index: {}]   ;;  %s4697_s6 = inlined_call_operand.vmem [shape: f32[2,64,128], index: 6, kind: output, shape index: {}]  }
   0x1 LB: > { %s2975_s22 = sadd.s32 4294967295, %s3944_s21   ;;  %p2979_p0 = scmp.ge.s32.totalorder %s3944_s21, 1  ;;  %s3944_s21 = sphi %s3982_s21, %s16_s21  }
   0x2   : > { %p212_p1 = scmp.lt.s32.totalorder %s3944_s21, 3 }
   0x4   : > { %p213_p2 = pnand %p2979_p0, %p212_p1 }
   0x5   : > { %v2983_v0 = vld [vmem:[%s4692_s1 + $0x4] sm:$0xf] (!%p213_p2)  ;;  %vm535_vm0 = vcmask (!%p213_p2), 1043456   ;;  %p242_p3 = scmp.lt.s32.totalorder (!%p213_p2), %s2975_s22, 1  ;;  %v3998_v2 = vld [vmem:[%s4692_s1] sm:$0xf] (!%p213_p2) }
   0x6   : > { %216 = sbr.rel (%p213_p2) target bundleno = 812 (0x32c), region = 44  ;;  %3846 = vmatprep.subr.msk.bf16.mxu0 (!%p213_p2), %vm535_vm0, %v2983_v0  ;;  %v537_v1 = vsel (!%p213_p2), %vm535_vm0, %v2983_v0, 0  ;;  %vm413_vm1 = vcmask (!%p213_p2), 64512   ;;  %vm415_vm2 = vcmask (!%p213_p2), 58368   ;;  %v617_v39 = vsel (!%p213_p2), %vm535_vm0, %v3998_v2, 0 }
   0x7   : > { %3395 = vmatpush3.bf16.msra.mxu0 (!%p213_p2), %v537_v1  ;;  %v4068_v46 = vld [vmem:[%s4692_s1 + $0x8] sm:$0xf] (!%p213_p2) }
   0x8   : > { %3847 = vmatprep.subr.msk.bf16.mxu0 (!%p213_p2), %vm535_vm0, %v3998_v2 }
   0xd   : > { %s4699_s22 = smov (!%p242_p3, %s2975_s22), 1 }
   0xe   : > { %s3856_s27 = smul.u32 320, %s4699_s22  ;;  %s3235_s17 = sshll.u32 %s4699_s22, 6 }
   0xf   : > { %s4678_s20 = scalar_lea.vmem %s4697_s6, %s3235_s17 }
  0x10   : > { %s4008_s30 = scalar_lea.vmem %s4691_s0, %s3856_s27 }
  0x11   : > { %v271_v3 = vld [vmem:[%s4008_s30 + $0x48] ss:$8 sps:$4 sm:$0xff]   ;;  %v275_v4 = vld [vmem:[%s4008_s30 + $0x58] ss:$136 sps:$4 sm:$0xff]   ;;  %v254_v18 = vld [vmem:[%s4008_s30 + $0x4] sm:$0x1] }
  0x12   : > { %v353_v5 = vunpack.c.h.bf16 %v271_v3  ;;  %v355_v6 = vunpack.c.l.bf16 %v275_v4  ;;  %v277_v7 = vld [vmem:[%s4008_s30 + $0x60] ss:$8 sps:$4 sm:$0xff]   ;;  %v281_v8 = vld [vmem:[%s4008_s30 + $0x70] ss:$8 sps:$4 sm:$0xff]   ;;  %v256_v23 = vld [vmem:[%s4008_s30 + $0xc] sm:$0x1]  ;;  %v334_v30 = vunpack.c.l.bf16 %v254_v18 }
  0x13   : > { %v285_v9 = vld [vmem:[%s4008_s30 + $0x80] ss:$8 sps:$4 sm:$0xff]   ;;  %v257_v11 = vld [vmem:[%s4008_s30 + $0x10] ss:$8 sps:$4 sm:$0xff]   ;;  %v357_v12 = vunpack.c.l.bf16 %v277_v7  ;;  %v359_v13 = vunpack.c.h.bf16 %v277_v7  ;;  %v361_v14 = vunpack.c.l.bf16 %v281_v8  ;;  %v363_v15 = vunpack.c.h.bf16 %v281_v8  ;;  %v258_v58 = vld [vmem:[%s4008_s30 + $0x14] sm:$0x1] }
  0x14   : > { %v253_v10 = vld [vmem:[%s4008_s30] ss:$8 sps:$4 sm:$0xff]   ;;  %435 = vst.msk [vmem:[#allocation2 + $0xa0] sm:$0xff] %vm413_vm1, %v353_v5  ;;  %437 = vst.msk [vmem:[#allocation2 + $0xb0] sm:$0xff] %vm413_vm1, %v355_v6  ;;  %v265_v17 = vld [vmem:[%s4008_s30 + $0x30] ss:$8 sps:$4 sm:$0xff]   ;;  %v365_v19 = vunpack.c.l.bf16 %v285_v9  ;;  %v367_v20 = vunpack.c.h.bf16 %v285_v9  ;;  %v337_v24 = vunpack.c.l.bf16 %v257_v11  ;;  %v339_v25 = vunpack.c.h.bf16 %v257_v11 }
  0x15   : > { %v261_v16 = vld [vmem:[%s4008_s30 + $0x20] ss:$8 sps:$4 sm:$0xff]   ;;  %v333_v21 = vunpack.c.l.bf16 %v253_v10  ;;  %v335_v22 = vunpack.c.h.bf16 %v253_v10  ;;  %439 = vst.msk [vmem:[#allocation2 + $0xc0] sm:$0xff] %vm413_vm1, %v357_v12  ;;  %441 = vst.msk [vmem:[#allocation2 + $0xd0] sm:$0xff] %vm413_vm1, %v359_v13  ;;  %v345_v28 = vunpack.c.l.bf16 %v265_v17  ;;  %v347_v29 = vunpack.c.h.bf16 %v265_v17  ;;  %v260_v59 = vld [vmem:[%s4008_s30 + $0x1c] sm:$0x1] }
  0x16   : > { %443 = vst.msk [vmem:[#allocation2 + $0xe0] sm:$0xff] %vm413_vm1, %v361_v14  ;;  %445 = vst.msk [vmem:[#allocation2 + $0xf0] sm:$0xff] %vm413_vm1, %v363_v15  ;;  %v341_v26 = vunpack.c.l.bf16 %v261_v16  ;;  %v343_v27 = vunpack.c.h.bf16 %v261_v16  ;;  %v336_v31 = vunpack.c.l.bf16 %v256_v23  ;;  %v262_v60 = vld [vmem:[%s4008_s30 + $0x24] sm:$0x1]  ;;  %v338_v62 = vunpack.c.l.bf16 %v258_v58  ;;  %v264_v0 = vld [vmem:[%s4008_s30 + $0x2c] sm:$0x1] }
  0x17   : > { %447 = vst.msk [vmem:[#allocation2 + $0x100] sm:$0xff] %vm413_vm1, %v365_v19  ;;  %449 = vst.msk [vmem:[#allocation2 + $0x110] sm:$0xff] %vm413_vm1, %v367_v20  ;;  %v340_v63 = vunpack.c.l.bf16 %v260_v59  ;;  %v342_v1 = vunpack.c.l.bf16 %v262_v60  ;;  %v266_v2 = vld [vmem:[%s4008_s30 + $0x34] sm:$0x1]  ;;  %v268_v3 = vld [vmem:[%s4008_s30 + $0x3c] sm:$0x1]  ;;  %v344_v5 = vunpack.c.l.bf16 %v264_v0 }
  0x18   : > { %414 = vst.msk [vmem:[#allocation2] sm:$0xff] %vm413_vm1, %v333_v21  ;;  %417 = vst.msk [vmem:[#allocation2 + $0x10] sm:$0xff] %vm413_vm1, %v335_v22  ;;  %v346_v6 = vunpack.c.l.bf16 %v266_v2  ;;  %v348_v7 = vunpack.c.l.bf16 %v268_v3  ;;  %v293_v8 = vld [vmem:[%s4008_s30 + $0xa0] ss:$8 sps:$4 sm:$0xff]   ;;  %v297_v9 = vld [vmem:[%s4008_s30 + $0xb0] ss:$8 sps:$4 sm:$0xff]  }
  0x19   : > { %419 = vst.msk [vmem:[#allocation2 + $0x20] sm:$0xff] %vm413_vm1, %v337_v24  ;;  %421 = vst.msk [vmem:[#allocation2 + $0x30] sm:$0xff] %vm413_vm1, %v339_v25  ;;  %v301_v10 = vld [vmem:[%s4008_s30 + $0xc0] ss:$8 sps:$4 sm:$0xff]   ;;  %v373_v11 = vunpack.c.l.bf16 %v293_v8  ;;  %v375_v12 = vunpack.c.h.bf16 %v293_v8  ;;  %v377_v13 = vunpack.c.l.bf16 %v297_v9  ;;  %v379_v14 = vunpack.c.h.bf16 %v297_v9  ;;  %v305_v15 = vld [vmem:[%s4008_s30 + $0xd0] ss:$8 sps:$4 sm:$0xff]  }
  0x1a   : > { %423 = vst.msk [vmem:[#allocation2 + $0x40] sm:$0xff] %vm413_vm1, %v341_v26  ;;  %425 = vst.msk [vmem:[#allocation2 + $0x50] sm:$0xff] %vm413_vm1, %v343_v27  ;;  %v313_v16 = vld [vmem:[%s4008_s30 + $0xf0] ss:$8 sps:$4 sm:$0xff]   ;;  %v317_v17 = vld [vmem:[%s4008_s30 + $0x100] ss:$8 sps:$4 sm:$0xff]   ;;  %v381_v18 = vunpack.c.l.bf16 %v301_v10  ;;  %v383_v19 = vunpack.c.h.bf16 %v301_v10  ;;  %v385_v20 = vunpack.c.l.bf16 %v305_v15  ;;  %v387_v21 = vunpack.c.h.bf16 %v305_v15 }
  0x1b   : > { %427 = vst.msk [vmem:[#allocation2 + $0x60] sm:$0xff] %vm413_vm1, %v345_v28  ;;  %429 = vst.msk [vmem:[#allocation2 + $0x70] sm:$0xff] %vm413_vm1, %v347_v29  ;;  %v509_v32 = vld [vmem:[#allocation2 + $0xa0] sm:$0xff]  ;;  %v4039_v33 = vld [vmem:[#allocation2 + $0xb0] sm:$0xff]  ;;  %v393_v25 = vunpack.c.l.bf16 %v313_v16  ;;  %v395_v26 = vunpack.c.h.bf16 %v313_v16  ;;  %v397_v27 = vunpack.c.l.bf16 %v317_v17  ;;  %v399_v28 = vunpack.c.h.bf16 %v317_v17 }
  0x1c   : > { %416 = vst.msk [vmem:[#allocation2 + $0x8] sm:$0x3] %vm415_vm2, %v334_v30  ;;  %418 = vst.msk [vmem:[#allocation2 + $0x18] sm:$0x3] %vm415_vm2, %v336_v31  ;;  %v517_v34 = vpack.c.bf16 %v4039_v33, %v509_v32  ;;  %v4042_v35 = vld [vmem:[#allocation2 + $0xc0] sm:$0xff]  ;;  %v4044_v36 = vld [vmem:[#allocation2 + $0xd0] sm:$0xff] }
  0x1d   : > { %v4046_v37 = vld [vmem:[#allocation2 + $0xe0] sm:$0xff]  ;;  %v518_v38 = vpack.c.bf16 %v4044_v36, %v4042_v35  ;;  %v4053_v40 = vld [vmem:[#allocation2 + $0xf0] sm:$0xff]  ;;  %v1206_v42 = vpack.c.bf16 %v4042_v35, %v4039_v33  ;;  %420 = vst.msk [vmem:[#allocation2 + $0x28] sm:$0x3] %vm415_vm2, %v338_v62  ;;  %422 = vst.msk [vmem:[#allocation2 + $0x38] sm:$0x3] %vm415_vm2, %v340_v63 }
  0x1e   : > { %3396 = vmatprep.mubr.msk.bf16.mxu0 %vm413_vm1, %v517_v34  ;;  %v4055_v41 = vld [vmem:[#allocation2 + $0x100] sm:$0xff]  ;;  %v1207_v43 = vpack.c.bf16 %v4046_v37, %v4044_v36  ;;  %v519_v44 = vpack.c.bf16 %v4053_v40, %v4046_v37  ;;  %v4075_v49 = vld [vmem:[#allocation2 + $0x110] sm:$0xff]  ;;  %424 = vst.msk [vmem:[#allocation2 + $0x48] sm:$0x3] %vm415_vm2, %v342_v1  ;;  %426 = vst.msk [vmem:[#allocation2 + $0x58] sm:$0x3] %vm415_vm2, %v344_v5 }
  0x1f   : > { %v4063_v45 = vld [vmem:[#allocation2 + $0x10] sm:$0xff]  ;;  %v1208_v48 = vpack.c.bf16 %v4055_v41, %v4053_v40  ;;  %3397 = vmatmul.mubr.msk.bf16.vlgmr.msra.gmra.mrb[0].mxu0 %vm413_vm1, %v518_v38  ;;  %v495_v56 = vld [vmem:[#allocation2] sm:$0xff]  ;;  %v520_v61 = vpack.c.bf16 %v4075_v49, %v4055_v41  ;;  %428 = vst.msk [vmem:[#allocation2 + $0x68] sm:$0x3] %vm415_vm2, %v346_v6  ;;  %430 = vst.msk [vmem:[#allocation2 + $0x78] sm:$0x3] %vm415_vm2, %v348_v7 }
  0x20   : > { %v4070_v47 = vld [vmem:[#allocation2 + $0x20] sm:$0xff]  ;;  %v4077_v50 = vld [vmem:[#allocation2 + $0x30] sm:$0xff]  ;;  %3405 = vmatpush3.bf16.msra.mxu0 %v617_v39  ;;  %3400 = vmatprep.mubr.msk.bf16.mxu0 %vm413_vm1, %v519_v44  ;;  %v503_v4 = vpack.c.bf16 %v4063_v45, %v495_v56  ;;  %455 = vst.msk [vmem:[#allocation2 + $0x140] sm:$0xff] %vm413_vm1, %v373_v11  ;;  %457 = vst.msk [vmem:[#allocation2 + $0x150] sm:$0xff] %vm413_vm1, %v375_v12  ;;  %v711_v16 = vsel %vm535_vm0, %v4068_v46, 0 }
  0x21   : > { %v4079_v51 = vld [vmem:[#allocation2 + $0x40] sm:$0xff]  ;;  %v1103_v52 = vpack.c.bf16 %v4070_v47, %v4063_v45  ;;  %v4084_v53 = vld [vmem:[#allocation2 + $0x50] sm:$0xff]  ;;  %3848 = vmatprep.subr.msk.bf16.mxu0 %vm535_vm0, %v4068_v46  ;;  %459 = vst.msk [vmem:[#allocation2 + $0x160] sm:$0xff] %vm413_vm1, %v377_v13  ;;  %461 = vst.msk [vmem:[#allocation2 + $0x170] sm:$0xff] %vm413_vm1, %v379_v14  ;;  %v504_v7 = vpack.c.bf16 %v4077_v50, %v4070_v47 }
  0x22   : > { %v4086_v54 = vld [vmem:[#allocation2 + $0x60] sm:$0xff]  ;;  %v1104_v55 = vpack.c.bf16 %v4079_v51, %v4077_v50  ;;  %v321_v22 = vld [vmem:[%s4008_s30 + $0x110] ss:$8 sps:$4 sm:$0xff]   ;;  %v296_v29 = vld [vmem:[%s4008_s30 + $0xac] sm:$0x1]  ;;  %463 = vst.msk [vmem:[#allocation2 + $0x180] sm:$0xff] %vm413_vm1, %v381_v18  ;;  %v505_v12 = vpack.c.bf16 %v4084_v53, %v4079_v51 }
  0x23   : > { %v1105_v57 = vpack.c.bf16 %v4086_v54, %v4084_v53  ;;  %v325_v23 = vld [vmem:[%s4008_s30 + $0x120] ss:$8 sps:$4 sm:$0xff]   ;;  %v294_v24 = vld [vmem:[%s4008_s30 + $0xa4] sm:$0x1]  ;;  %v298_v30 = vld [vmem:[%s4008_s30 + $0xb4] sm:$0x1]  ;;  %v401_v32 = vunpack.c.l.bf16 %v321_v22  ;;  %v403_v34 = vunpack.c.h.bf16 %v321_v22  ;;  %v376_v60 = vunpack.c.l.bf16 %v296_v29 }
  0x24   : > { %v300_v31 = vld [vmem:[%s4008_s30 + $0xbc] sm:$0x1]  ;;  %465 = vst.msk [vmem:[#allocation2 + $0x190] sm:$0xff] %vm413_vm1, %v383_v19  ;;  %467 = vst.msk [vmem:[#allocation2 + $0x1a0] sm:$0xff] %vm413_vm1, %v385_v20  ;;  %v405_v38 = vunpack.c.l.bf16 %v325_v23  ;;  %v407_v39 = vunpack.c.h.bf16 %v325_v23  ;;  %v302_v44 = vld [vmem:[%s4008_s30 + $0xc4] sm:$0x1]  ;;  %v374_v59 = vunpack.c.l.bf16 %v294_v24 }
  0x25   : > { %469 = vst.msk [vmem:[#allocation2 + $0x1b0] sm:$0xff] %vm413_vm1, %v387_v21  ;;  %v304_v56 = vld [vmem:[%s4008_s30 + $0xcc] sm:$0x1]  ;;  %v306_v58 = vld [vmem:[%s4008_s30 + $0xd4] sm:$0x1]  ;;  %475 = vst.msk [vmem:[#allocation2 + $0x1e0] sm:$0xff] %vm413_vm1, %v393_v25  ;;  %v380_v62 = vunpack.c.l.bf16 %v300_v31  ;;  %v382_v3 = vunpack.c.l.bf16 %v302_v44 }
  0x26   : > { %477 = vst.msk [vmem:[#allocation2 + $0x1f0] sm:$0xff] %vm413_vm1, %v395_v26  ;;  %479 = vst.msk [vmem:[#allocation2 + $0x200] sm:$0xff] %vm413_vm1, %v397_v27  ;;  %v308_v63 = vld [vmem:[%s4008_s30 + $0xdc] sm:$0x1]  ;;  %v269_v0 = vld [vmem:[%s4008_s30 + $0x40] ss:$80 sps:$4 sm:$0xff]   ;;  %v386_v5 = vunpack.c.l.bf16 %v306_v58 }
  0x27   : > { %3401 = vmatmul.mubr.msk.bf16.gmra.mrb[4].mxu0 %vm413_vm1, %v520_v61  ;;  %481 = vst.msk [vmem:[#allocation2 + $0x210] sm:$0xff] %vm413_vm1, %v399_v28  ;;  %v378_v61 = vunpack.c.l.bf16 %v298_v30  ;;  %v270_v1 = vld [vmem:[%s4008_s30 + $0x44] sm:$0x1]  ;;  %v4141_v2 = vld [vmem:[#allocation2 + $0x11] sm:$0xff]  ;;  %483 = vst.msk [vmem:[#allocation2 + $0x220] sm:$0xff] %vm413_vm1, %v401_v32  ;;  %v388_v6 = vunpack.c.l.bf16 %v308_v63  ;;  %v349_v8 = vunpack.c.l.bf16 %v269_v0  ;;  %v369_v9 = vunpack.c.h.bf16 %v269_v0 }
  0x28   : > { %3406 = vmatprep.mubr.msk.bf16.mxu0 %vm413_vm1, %v503_v4  ;;  %485 = vst.msk [vmem:[#allocation2 + $0x230] sm:$0xff] %vm413_vm1, %v403_v34  ;;  %487 = vst.msk [vmem:[#allocation2 + $0x240] sm:$0xff] %vm413_vm1, %v405_v38  ;;  %v384_v4 = vunpack.c.l.bf16 %v304_v56  ;;  %v350_v10 = vunpack.c.l.bf16 %v270_v1  ;;  %v3867_v11 = vld [vmem:[%s4694_s3 + $0x80] sm:$0xff]   ;;  %v4160_v14 = vld [vmem:[#allocation2 + $0x31] sm:$0xff] }
  0x29   : > { %489 = vst.msk [vmem:[#allocation2 + $0x250] sm:$0xff] %vm413_vm1, %v407_v39  ;;  %v4158_v13 = vld [vmem:[#allocation2 + $0x21] sm:$0xff]  ;;  %v4170_v17 = vld [vmem:[#allocation2 + $0x51] sm:$0xff]  ;;  %431 = vst.msk [vmem:[#allocation2 + $0x80] sm:$0xff] %vm413_vm1, %v349_v8  ;;  %3532 = vmatprep.subr.bf16.mxu1 %v3867_v11 }
  0x2a   : > { %456 = vst.msk [vmem:[#allocation2 + $0x148] sm:$0x3] %vm415_vm2, %v374_v59  ;;  %458 = vst.msk [vmem:[#allocation2 + $0x158] sm:$0x3] %vm415_vm2, %v376_v60  ;;  %v4162_v15 = vld [vmem:[#allocation2 + $0x41] sm:$0xff]  ;;  %v1308_v19 = vpack.c.bf16 %v4158_v13, %v4141_v2  ;;  %3533 = vmatpush3.bf16.msra.mxu1 %v3867_v11  ;;  %v4188_v22 = vld [vmem:[#allocation2 + $0x70] sm:$0xff]  ;;  %v693_v30 = vpack.c.bf16 %v4160_v14, %v4158_v13 }
  0x2b   : > { %460 = vst.msk [vmem:[#allocation2 + $0x168] sm:$0x3] %vm415_vm2, %v378_v61  ;;  %462 = vst.msk [vmem:[#allocation2 + $0x178] sm:$0x3] %vm415_vm2, %v380_v62  ;;  %v4172_v18 = vld [vmem:[#allocation2 + $0x61] sm:$0xff]  ;;  %v1309_v20 = vpack.c.bf16 %v4162_v15, %v4160_v14  ;;  %v506_v24 = vpack.c.bf16 %v4188_v22, %v4086_v54  ;;  %v3871_v29 = vld [vmem:[%s4694_s3 + $0x90] sm:$0xff]   ;;  %v694_v34 = vpack.c.bf16 %v4170_v17, %v4162_v15 }
  0x2c   : > { %464 = vst.msk [vmem:[#allocation2 + $0x188] sm:$0x3] %vm415_vm2, %v382_v3  ;;  %466 = vst.msk [vmem:[#allocation2 + $0x198] sm:$0x3] %vm415_vm2, %v384_v4  ;;  %v2997_v46 = vld [vmem:[%s4692_s1 + $0xc] sm:$0xf]  ;;  %v1310_v21 = vpack.c.bf16 %v4172_v18, %v4170_v17 }
  0x2d   : > { %468 = vst.msk [vmem:[#allocation2 + $0x1a8] sm:$0x3] %vm415_vm2, %v386_v5  ;;  %470 = vst.msk [vmem:[#allocation2 + $0x1b8] sm:$0x3] %vm415_vm2, %v388_v6  ;;  %v684_v23 = vld [vmem:[#allocation2 + $0x1] sm:$0xff]  ;;  %v814_v31 = vsel %vm535_vm0, %v2997_v46, 0 }
  0x2e   : > { %451 = vst.msk [vmem:[#allocation2 + $0x120] sm:$0xff] %vm413_vm1, %v369_v9  ;;  %v692_v25 = vpack.c.bf16 %v4141_v2, %v684_v23  ;;  %v3002_v26 = vld [vmem:[%s4692_s1 + $0x10] sm:$0xf]  ;;  %v3869_v27 = vld [vmem:[%s4694_s3 + $0x88] sm:$0xff]   ;;  %v3007_v28 = vld [vmem:[%s4692_s1 + $0x14] sm:$0xf] }
  0x2f   : > { %432 = vst.msk [vmem:[#allocation2 + $0x88] sm:$0x3] %vm415_vm2, %v350_v10  ;;  %3407 = vmatmul.mubr.msk.bf16.vlgmr.msra.gmra.mrb[0].mxu0 %vm413_vm1, %v504_v7  ;;  %3534 = vmatprep.subr.bf16.mxu1 %v3869_v27  ;;  %v917_v32 = vsel %vm535_vm0, %v3002_v26, 0  ;;  %v1019_v38 = vsel %vm535_vm0, %v3007_v28, 0  ;;  %v3873_v39 = vld [vmem:[%s4694_s3 + $0x98] sm:$0xff]   ;;  %v787_v56 = vld [vmem:[#allocation2 + $0x140] sm:$0xff] }
  0x30   : > { %3415 = vmatpush3.bf16.msra.mxu0 %v711_v16  ;;  %3410 = vmatprep.mubr.msk.bf16.mxu0 %vm413_vm1, %v505_v12  ;;  %v4218_v44 = vld [vmem:[#allocation2 + $0x71] sm:$0xff]  ;;  %v789_v61 = vld [vmem:[#allocation2 + $0x160] sm:$0xff]  ;;  %v3868_v36 = vld [vmem:[%s4694_s3 + $0x48] sm:$0xff]  }
  0x31   : > { %3849 = vmatprep.subr.msk.bf16.mxu0 %vm535_vm0, %v2997_v46  ;;  %3535 = vmatpush3.bf16.msra.mxu1 %v3869_v27  ;;  %v788_v58 = vld [vmem:[#allocation2 + $0x150] sm:$0xff]  ;;  %v695_v59 = vpack.c.bf16 %v4218_v44, %v4172_v18  ;;  %v791_v63 = vld [vmem:[#allocation2 + $0x180] sm:$0xff]  ;;  %v3877_v54 = vld [vmem:[%s4694_s3 + $0xa8] sm:$0xff]  }
  0x32   : > { %3536 = vmatprep.subr.bf16.mxu1 %v3871_v29  ;;  %v795_v60 = vpack.c.bf16 %v788_v58, %v787_v56  ;;  %v790_v62 = vld [vmem:[#allocation2 + $0x170] sm:$0xff]  ;;  %v793_v4 = vld [vmem:[#allocation2 + $0x1a0] sm:$0xff]  ;;  %v3881_v13 = vld [vmem:[%s4694_s3 + $0xb8] sm:$0xff]  }
  0x33   : > { %v792_v0 = vld [vmem:[#allocation2 + $0x190] sm:$0xff]  ;;  %v796_v1 = vpack.c.bf16 %v790_v62, %v789_v61  ;;  %v890_v6 = vld [vmem:[#allocation2 + $0x1e0] sm:$0xff] }
  0x34   : > { %v797_v3 = vpack.c.bf16 %v792_v0, %v791_v63  ;;  %v794_v5 = vld [vmem:[#allocation2 + $0x1b0] sm:$0xff]  ;;  %v892_v10 = vld [vmem:[#allocation2 + $0x200] sm:$0xff] }
  0x35   : > { %3537 = vmatpush3.bf16.msra.mxu1 %v3871_v29  ;;  %v891_v7 = vld [vmem:[#allocation2 + $0x1f0] sm:$0xff]  ;;  %v798_v8 = vpack.c.bf16 %v794_v5, %v793_v4  ;;  %v894_v12 = vld [vmem:[#allocation2 + $0x220] sm:$0xff] }
  0x36   : > { %3538 = vmatprep.subr.bf16.mxu1 %v3873_v39  ;;  %v898_v9 = vpack.c.bf16 %v891_v7, %v890_v6  ;;  %v893_v11 = vld [vmem:[#allocation2 + $0x210] sm:$0xff]  ;;  %v992_v27 = vld [vmem:[#allocation2 + $0x141] sm:$0xff]  ;;  %v3027_v15 = vld [vmem:[%s4693_s2] ss:$0 sm:$0xff] }
  0x37   : > { %3411 = vmatmul.mubr.msk.bf16.gmra.mrb[4].mxu0 %vm413_vm1, %v506_v24  ;;  %v895_v16 = vld [vmem:[#allocation2 + $0x230] sm:$0xff]  ;;  %v899_v46 = vpack.c.bf16 %v893_v11, %v892_v10  ;;  %v3012_v24 = vld [vmem:[%s4692_s1 + $0x18] sm:$0xf]  ;;  %v3022_v0 = vld [vmem:[%s4692_s1 + $0x20] sm:$0xf] }
  0x38   : > { %3416 = vmatprep.mubr.msk.bf16.mxu0 %vm413_vm1, %v692_v25  ;;  %v900_v23 = vpack.c.bf16 %v895_v16, %v894_v12  ;;  %v896_v25 = vld [vmem:[#allocation2 + $0x240] sm:$0xff]  ;;  %v999_v61 = vld [vmem:[#allocation2 + $0x1b1] sm:$0xff]  ;;  %v1327_v50 = vsel %vm535_vm0, %v3022_v0, 0  ;;  %v3884_v12 = vld [vmem:[%s4694_s3 + $0x8] sm:$0xff]  }
  0x39   : > { %3539 = vmatpush3.bf16.msra.mxu1 %v3873_v39  ;;  %v997_v39 = vld [vmem:[#allocation2 + $0x191] sm:$0xff]  ;;  %v1102_v45 = vld [vmem:[#allocation2 + $0x80] sm:$0xff] }
  0x3a   : > { %v1106_v47 = vpack.c.bf16 %v1102_v45, %v4188_v22  ;;  %v3866_v51 = vld [vmem:[%s4694_s3 + $0x40] sm:$0xff]   ;;  %v3870_v40 = vld [vmem:[%s4694_s3 + $0x50] sm:$0xff]  }
  0x3b   : > { %v1205_v33 = vld [vmem:[#allocation2 + $0x120] sm:$0xff]  ;;  %v3878_v53 = vld [vmem:[%s4694_s3 + $0x70] sm:$0xff]  }
  0x3c   : > { %v1209_v35 = vpack.c.bf16 %v1205_v33, %v4075_v49  ;;  %v1307_v37 = vld [vmem:[#allocation2 + $0x81] sm:$0xff]  ;;  %v3946_v49 = vmov 0.0  }
  0x3d   : > { %v1311_v41 = vpack.c.bf16 %v1307_v37, %v4218_v44  ;;  %1431 = vst [vmem:[#allocation3 + $0x30] sm:$0xff] %v3946_v49  ;;  %1432 = vst [vmem:[#allocation3 + $0x38] sm:$0x3] %v3946_v49  ;;  %v3882_v2 = vld [vmem:[%s4694_s3] sm:$0xff]   ;;  %v3887_v37 = vld [vmem:[%s4694_s3 + $0xd0] sm:$0xff]  }
  0x3e   : > { %1425 = vst [vmem:[#allocation3] sm:$0xff] %v3946_v49  ;;  %1426 = vst [vmem:[#allocation3 + $0x8] sm:$0x3] %v3946_v49  ;;  %v4358_v14 = vld [vmem:[%s4694_s3 + $0xc0] sm:$0xff]  }
  0x3f   : > { %3417 = vmatmul.mubr.msk.bf16.vlgmr.msra.gmra.mrb[0].mxu0 %vm413_vm1, %v693_v30  ;;  %1427 = vst [vmem:[#allocation3 + $0x10] sm:$0xff] %v3946_v49  ;;  %1428 = vst [vmem:[#allocation3 + $0x18] sm:$0x3] %v3946_v49 }
  0x40   : > { %3425 = vmatpush3.bf16.msra.mxu0 %v814_v31  ;;  %3420 = vmatprep.mubr.msk.bf16.mxu0 %vm413_vm1, %v694_v34  ;;  %v994_v31 = vld [vmem:[#allocation2 + $0x161] sm:$0xff]  ;;  %1429 = vst [vmem:[#allocation3 + $0x20] sm:$0xff] %v3946_v49  ;;  %1430 = vst [vmem:[#allocation3 + $0x28] sm:$0x3] %v3946_v49 }
  0x41   : > { %3850 = vmatprep.subr.msk.bf16.mxu0 %vm535_vm0, %v3002_v26  ;;  %v897_v26 = vld [vmem:[#allocation2 + $0x250] sm:$0xff]  ;;  %v996_v34 = vld [vmem:[#allocation2 + $0x181] sm:$0xff]  ;;  %1433 = vst [vmem:[#allocation3 + $0x40] sm:$0xff] %v3946_v49  ;;  %1434 = vst [vmem:[#allocation3 + $0x48] sm:$0x3] %v3946_v49 }
  0x42   : > { %v901_v29 = vpack.c.bf16 %v897_v26, %v896_v25  ;;  %v1002_v58 = vpack.c.bf16 %v997_v39, %v996_v34  ;;  %1435 = vst [vmem:[#allocation3 + $0x50] sm:$0xff] %v3946_v49  ;;  %1436 = vst [vmem:[#allocation3 + $0x58] sm:$0x3] %v3946_v49  ;;  %v3886_v39 = vld [vmem:[%s4694_s3 + $0x10] sm:$0xff]  }
  0x43   : > { %1437 = vst [vmem:[#allocation3 + $0x60] sm:$0xff] %v3946_v49  ;;  %1438 = vst [vmem:[#allocation3 + $0x68] sm:$0x3] %v3946_v49 }
  0x44   : > { %1439 = vst [vmem:[#allocation3 + $0x70] sm:$0xff] %v3946_v49  ;;  %1440 = vst [vmem:[#allocation3 + $0x78] sm:$0x3] %v3946_v49 }
  0x45   : > { %1441 = vst [vmem:[#allocation3 + $0x80] sm:$0xff] %v3946_v49  ;;  %1442 = vst [vmem:[#allocation3 + $0x88] sm:$0x3] %v3946_v49 }
  0x46   : > { %1443 = vst [vmem:[#allocation3 + $0x90] sm:$0xff] %v3946_v49  ;;  %1444 = vst [vmem:[#allocation3 + $0x98] sm:$0x3] %v3946_v49 }
  0x47   : > { %3421 = vmatmul.mubr.msk.bf16.gmra.mrb[4].mxu0 %vm413_vm1, %v695_v59  ;;  %v1122_v59 = vsel %vm535_vm0, %v3012_v24, 0 }
  0x48   : > { %3426 = vmatprep.mubr.msk.bf16.mxu0 %vm413_vm1, %v795_v60  ;;  %v998_v60 = vld [vmem:[#allocation2 + $0x1a1] sm:$0xff] }
  0x49   : > { %v1003_v62 = vpack.c.bf16 %v999_v61, %v998_v60 }
  0x4f   : > { %3427 = vmatmul.mubr.msk.bf16.vlgmr.msra.gmra.mrb[0].mxu0 %vm413_vm1, %v796_v1 }
  0x50   : > { %3435 = vmatpush3.bf16.msra.mxu0 %v917_v32  ;;  %3430 = vmatprep.mubr.msk.bf16.mxu0 %vm413_vm1, %v797_v3  ;;  %v995_v32 = vld [vmem:[#allocation2 + $0x171] sm:$0xff]  ;;  %v1482_v3 = vld [vmem:[#allocation3 + $0x1] sm:$0xff] }
  0x51   : > { %3851 = vmatprep.subr.msk.bf16.mxu0 %vm535_vm0, %v3007_v28  ;;  %v993_v28 = vld [vmem:[#allocation2 + $0x151] sm:$0xff]  ;;  %v1001_v56 = vpack.c.bf16 %v995_v32, %v994_v31 }
  0x52   : > { %v1000_v30 = vpack.c.bf16 %v993_v28, %v992_v27 }
  0x57   : > { %3431 = vmatmul.mubr.msk.bf16.gmra.mrb[4].mxu0 %vm413_vm1, %v798_v8 }
  0x58   : > { %3436 = vmatprep.mubr.msk.bf16.mxu0 %vm413_vm1, %v898_v9 }
  0x5f   : > { %3437 = vmatmul.mubr.msk.bf16.vlgmr.msra.gmra.mrb[0].mxu0 %vm413_vm1, %v899_v46 }
  0x60   : > { %3445 = vmatpush3.bf16.msra.mxu0 %v1019_v38  ;;  %3440 = vmatprep.mubr.msk.bf16.mxu0 %vm413_vm1, %v900_v23  ;;  %v3017_v38 = vld [vmem:[%s4692_s1 + $0x1c] sm:$0xf] }
  0x61   : > { %3852 = vmatprep.subr.msk.bf16.mxu0 %vm535_vm0, %v3012_v24  ;;  %v1225_v63 = vsel %vm535_vm0, %v3017_v38, 0 }
  0x67   : > { %3441 = vmatmul.mubr.msk.bf16.gmra.mrb[4].mxu0 %vm413_vm1, %v901_v29  ;;  %v1737_v29 = vld [vmem:[#allocation3 + $0x2] sm:$0xff] }
  0x68   : > { %3446 = vmatprep.mubr.msk.bf16.mxu0 %vm413_vm1, %v1000_v30 }
  0x6f   : > { %3447 = vmatmul.mubr.msk.bf16.vlgmr.msra.gmra.mrb[0].mxu0 %vm413_vm1, %v1001_v56 }
  0x70   : > { %3455 = vmatpush3.bf16.msra.mxu0 %v1122_v59  ;;  %3450 = vmatprep.mubr.msk.bf16.mxu0 %vm413_vm1, %v1002_v58 }
  0x71   : > { %3853 = vmatprep.subr.msk.bf16.mxu0 %vm535_vm0, %v3017_v38 }
  0x77   : > { %3451 = vmatmul.mubr.msk.bf16.gmra.mrb[4].mxu0 %vm413_vm1, %v1003_v62 }
  0x78   : > { %3456 = vmatprep.mubr.msk.bf16.mxu0 %vm413_vm1, %v1103_v52  ;;  %v3875_v52 = vld [vmem:[%s4694_s3 + $0xa0] sm:$0xff]  }
  0x79   : > { %3540 = vmatprep.subr.bf16.mxu1 %v3875_v52 }
  0x7a   : > { %3541 = vmatpush3.bf16.msra.mxu1 %v3875_v52 }
  0x7b   : > { %3542 = vmatprep.subr.bf16.mxu1 %v3877_v54 }
  0x7e   : > { %3543 = vmatpush3.bf16.msra.mxu1 %v3877_v54  ;;  %v3889_v54 = vld [vmem:[%s4694_s3 + $0xd8] sm:$0xff]  }
  0x7f   : > { %3457 = vmatmul.mubr.msk.bf16.vlgmr.msra.gmra.mrb[0].mxu0 %vm413_vm1, %v1104_v55  ;;  %v3880_v55 = vld [vmem:[%s4694_s3 + $0x78] sm:$0xff]  }
  0x80   : > { %3465 = vmatpush3.bf16.msra.mxu0 %v1225_v63  ;;  %3460 = vmatprep.mubr.msk.bf16.mxu0 %vm413_vm1, %v1105_v57  ;;  %v3879_v57 = vld [vmem:[%s4694_s3 + $0xb0] sm:$0xff]  }
  0x81   : > { %3854 = vmatprep.subr.msk.bf16.mxu0 %vm535_vm0, %v3022_v0  ;;  %3544 = vmatprep.subr.bf16.mxu1 %v3879_v57 }
  0x82   : > { %3545 = vmatpush3.bf16.msra.mxu1 %v3879_v57  ;;  %v3892_v57 = vld [vmem:[%s4694_s3 + $0x28] sm:$0xff]  }
  0x83   : > { %3546 = vmatprep.subr.bf16.mxu1 %v3881_v13 }
  0x86   : > { %3547 = vmatpush3.bf16.msra.mxu1 %v3881_v13  ;;  %v3891_v13 = vld [vmem:[%s4694_s3 + $0xe0] sm:$0xff]  }
  0x87   : > { %3461 = vmatmul.mubr.msk.bf16.gmra.mrb[4].mxu0 %vm413_vm1, %v1106_v47  ;;  %3556 = vmatprep.subr.bf16.mxu1 %v4358_v14  ;;  %v3885_v47 = vld [vmem:[%s4694_s3 + $0xc8] sm:$0xff]  }
  0x88   : > { %3466 = vmatprep.mubr.msk.bf16.mxu0 %vm413_vm1, %v1206_v42  ;;  %v3872_v42 = vld [vmem:[%s4694_s3 + $0x58] sm:$0xff]  }
  0x8f   : > { %3467 = vmatmul.mubr.msk.bf16.vlgmr.msra.gmra.mrb[0].mxu0 %vm413_vm1, %v1207_v43  ;;  %v3874_v43 = vld [vmem:[%s4694_s3 + $0x60] sm:$0xff]  }
  0x90   : > { %3475 = vmatpush3.bf16.msra.mxu0 %v1327_v50  ;;  %3470 = vmatprep.mubr.msk.bf16.mxu0 %vm413_vm1, %v1208_v48  ;;  %v3876_v48 = vld [vmem:[%s4694_s3 + $0x68] sm:$0xff]  }
  0x91   : > { %3484 = vmatprep.subr.bf16.mxu0 %v3866_v51 }
  0x97   : > { %3471 = vmatmul.mubr.msk.bf16.gmra.mrb[4].mxu0 %vm413_vm1, %v1209_v35 }
  0x98   : > { %3476 = vmatprep.mubr.msk.bf16.mxu0 %vm413_vm1, %v1308_v19 }
  0x9f   : > { %3477 = vmatmul.mubr.msk.bf16.vlgmr.msra.gmra.mrb[0].mxu0 %vm413_vm1, %v1309_v20 }
  0xa0   : > { %3480 = vmatprep.mubr.msk.bf16.mxu0 %vm413_vm1, %v1310_v21  ;;  %3485 = vmatpush3.bf16.msra.mxu0 %v3866_v51  ;;  %v3888_v51 = vld [vmem:[%s4694_s3 + $0x18] sm:$0xff]  }
  0xa1   : > { %3486 = vmatprep.subr.bf16.mxu0 %v3868_v36 }
  0xa4   : > { %3487 = vmatpush3.bf16.msra.mxu0 %v3868_v36 }
  0xa5   : > { %3488 = vmatprep.subr.bf16.mxu0 %v3870_v40 }
  0xa7   : > { %3481 = vmatmul.mubr.msk.bf16.gmra.mrb[4].mxu0 %vm413_vm1, %v1311_v41  ;;  %v3890_v41 = vld [vmem:[%s4694_s3 + $0x20] sm:$0xff]  }
  0xa8   : > { %3489 = vmatpush3.bf16.msra.mxu0 %v3870_v40 }
  0xa9   : > { %3490 = vmatprep.subr.bf16.mxu0 %v3872_v42 }
  0xac   : > { %3491 = vmatpush3.bf16.msra.mxu0 %v3872_v42 }
  0xad   : > { %3492 = vmatprep.subr.bf16.mxu0 %v3874_v43 }
  0xb0   : > { %3493 = vmatpush3.bf16.msra.mxu0 %v3874_v43 }
  0xb1   : > { %3494 = vmatprep.subr.bf16.mxu0 %v3876_v48 }
  0xb4   : > { %3495 = vmatpush3.bf16.msra.mxu0 %v3876_v48 }
  0xb5   : > { %3496 = vmatprep.subr.bf16.mxu0 %v3878_v53 }
  0xb8   : > { %3497 = vmatpush3.bf16.msra.mxu0 %v3878_v53 }
  0xb9   : > { %3498 = vmatprep.subr.bf16.mxu0 %v3880_v55 }
  0xbc   : > { %3499 = vmatpush3.bf16.msra.mxu0 %v3880_v55 }
  0xbd   : > { %3508 = vmatprep.subr.bf16.mxu0 %v3882_v2 }
 0x172   : > { %v3478_v17 = vpop.f32.mrb[0].mxu0 }
 0x173   : > { %v1411_v18 = vadd.f32 %v3478_v17, %v3027_v15  ;;  %v1363_v19 = vpop.f32.mrb[1].mxu0  ;;  %v3896_v17 = vld [vmem:[%s4694_s3 + $0x38] sm:$0xff]  }
 0x174   : > { %v1409_v20 = vadd.f32 %v3027_v15, %v1363_v19  ;;  %v3479_v21 = vpop.f32.mrb[2].mxu0 }
 0x175   : > { %v4364_v22 = vmax.f32 %v1411_v18, 0.0  ;;  %v1412_v44 = vadd.f32 %v3479_v21, %v3027_v15  ;;  %v1366_v1 = vpop.f32.mrb[3].mxu0  ;;  %v3895_v18 = vld [vmem:[%s4694_s3 + $0xf0] sm:$0xff]  }
 0x176   : > { %v4366_v4 = vmax.f32 %v1409_v20, 0.0  ;;  %v1410_v5 = vadd.f32 %v3027_v15, %v1366_v1  ;;  %v3897_v20 = vld [vmem:[%s4694_s3 + $0xf8] sm:$0xff]  }
 0x177   : > { %1448 = vst [vmem:[#allocation3 + $0x31] sm:$0xff] %v4364_v22  ;;  %v4369_v6 = vmax.f32 %v1412_v44, 0.0 }
 0x178   : > { %1446 = vst [vmem:[#allocation3 + $0x11] sm:$0xff] %v4366_v4  ;;  %v4372_v7 = vmax.f32 %v1410_v5, 0.0  ;;  %v1490_v8 = vpack.c.bf16 %v4366_v4, %v1482_v3  ;;  %v3898_v5 = vld [vmem:[%s4694_s3 + $0x100] sm:$0xff]  }
 0x179   : > { %1449 = vst [vmem:[#allocation3 + $0x41] sm:$0xff] %v4369_v6  ;;  %v2046_v9 = vpack.c.bf16 %v4369_v6, %v4364_v22 }
 0x17a   : > { %1447 = vst [vmem:[#allocation3 + $0x21] sm:$0xff] %v4372_v7  ;;  %v3482_v10 = vpop.f32.mrb[4].mxu0  ;;  %3500 = vmatprep.mubr.bf16.mxu0 %v1490_v8  ;;  %v4381_v11 = vpack.c.bf16 %v4364_v22, %v4372_v7  ;;  %v2045_v16 = vpack.c.bf16 %v4372_v7, %v4366_v4  ;;  %v3904_v4 = vld [vmem:[%s4694_s3 + $0x130] sm:$0xff]  }
 0x17b   : > { %v1415_v46 = vadd.f32 %v3482_v10, %v3027_v15  ;;  %v1379_v23 = vpop.f32.mrb[5].mxu0  ;;  %v2795_v22 = vld [vmem:[#allocation2 + $0x250] sm:$0xff] }
 0x17c   : > { %v1413_v24 = vadd.f32 %v3027_v15, %v1379_v23  ;;  %v3483_v25 = vpop.f32.mrb[6].mxu0  ;;  %3501 = vmatmul.mubr.bf16.vlgmr.msra.gmra.mrb[8].mxu0 %v4381_v11 }
 0x17d   : > { %v4389_v26 = vmax.f32 %v1415_v46, 0.0  ;;  %v1416_v27 = vadd.f32 %v3483_v25, %v3027_v15  ;;  %v1382_v28 = vpop.f32.mrb[7].mxu0  ;;  %3509 = vmatpush3.bf16.msra.mxu0 %v3882_v2  ;;  %v3900_v25 = vld [vmem:[%s4694_s3 + $0x110] sm:$0xff]  }
 0x17e   : > { %v4391_v30 = vmax.f32 %v1413_v24, 0.0  ;;  %v1414_v31 = vadd.f32 %v3027_v15, %v1382_v28  ;;  %3510 = vmatprep.subr.bf16.mxu0 %v3884_v12  ;;  %v4405_v59 = vld [vmem:[#allocation3 + $0x32] sm:$0xff]  ;;  %v3893_v15 = vld [vmem:[%s4694_s3 + $0xe8] sm:$0xff]  }
 0x17f   : > { %1452 = vst [vmem:[#allocation3 + $0x71] sm:$0xff] %v4389_v26  ;;  %v4394_v32 = vmax.f32 %v1416_v27, 0.0  ;;  %v4396_v34 = vld [vmem:[#allocation3 + $0x12] sm:$0xff] }
 0x180   : > { %1450 = vst [vmem:[#allocation3 + $0x51] sm:$0xff] %v4391_v30  ;;  %v4402_v56 = vmax.f32 %v1414_v31, 0.0  ;;  %v1745_v58 = vpack.c.bf16 %v4396_v34, %v1737_v29  ;;  %v4409_v38 = vpack.c.bf16 %v4391_v30, %v4369_v6  ;;  %v4411_v60 = vld [vmem:[#allocation3 + $0x42] sm:$0xff]  ;;  %v1455_v62 = vld [vmem:[#allocation3 + $0x10] sm:$0xff]  ;;  %v3901_v29 = vld [vmem:[%s4694_s3 + $0x118] sm:$0xff]  }
 0x181   : > { %1453 = vst [vmem:[#allocation3 + $0x81] sm:$0xff] %v4394_v32  ;;  %v4414_v61 = vld [vmem:[#allocation3 + $0x22] sm:$0xff]  ;;  %3511 = vmatpush3.bf16.msra.mxu0 %v3884_v12  ;;  %v2048_v63 = vpack.c.bf16 %v4394_v32, %v4389_v26  ;;  %v2196_v0 = vpack.c.bf16 %v4411_v60, %v4405_v59  ;;  %v1462_v36 = vpack.c.bf16 %v1455_v62, %v3946_v49  ;;  %v1457_v21 = vld [vmem:[#allocation3 + $0x30] sm:$0xff]  ;;  %v3909_v6 = vld [vmem:[%s4694_s3 + $0x158] sm:$0xff]  }
 0x182   : > { %1451 = vst [vmem:[#allocation3 + $0x61] sm:$0xff] %v4402_v56  ;;  %3548 = vmatprep.mubr.bf16.mxu1 %v1745_v58  ;;  %v4423_v45 = vpack.c.bf16 %v4405_v59, %v4414_v61  ;;  %3504 = vmatprep.mubr.bf16.mxu0 %v4409_v38  ;;  %v4431_v50 = vpack.c.bf16 %v4389_v26, %v4402_v56  ;;  %v1888_v43 = vld [vmem:[#allocation3 + $0x20] sm:$0xff]  ;;  %v3899_v12 = vld [vmem:[%s4694_s3 + $0x108] sm:$0xff]   ;;  %v3912_v26 = vld [vmem:[%s4694_s3 + $0x170] sm:$0xff]  }
 0x183   : > { %3512 = vmatprep.subr.bf16.mxu0 %v3886_v39  ;;  %v2047_v33 = vpack.c.bf16 %v4402_v56, %v4391_v30  ;;  %v2195_v35 = vpack.c.bf16 %v4414_v61, %v4396_v34  ;;  %v1895_v55 = vpack.c.bf16 %v1888_v43, %v1455_v62  ;;  %v4492_v44 = vpack.c.bf16 %v1457_v21, %v1888_v43  ;;  %v1890_v1 = vld [vmem:[#allocation3 + $0x40] sm:$0xff]  ;;  %v2791_v43 = vld [vmem:[#allocation2 + $0x210] sm:$0xff]  ;;  %v3911_v56 = vld [vmem:[%s4694_s3 + $0x168] sm:$0xff]  }
 0x184   : > { %3549 = vmatmul.mubr.bf16.vlgmr.msra.gmra.mrb[0].mxu1 %v4423_v45  ;;  %3505 = vmatmul.mubr.bf16.gmra.mrb[12].mxu0 %v4431_v50  ;;  %v1896_v10 = vpack.c.bf16 %v1890_v1, %v1457_v21  ;;  %v3902_v31 = vld [vmem:[%s4694_s3 + $0x120] sm:$0xff]   ;;  %v3913_v34 = vld [vmem:[%s4694_s3 + $0x178] sm:$0xff]  }
 0x185   : > { %3557 = vmatpush3.bf16.msra.mxu1 %v4358_v14  ;;  %3513 = vmatpush3.bf16.msra.mxu0 %v3886_v39  ;;  %v3894_v14 = vld [vmem:[%s4694_s3 + $0x30] sm:$0xff]   ;;  %v3903_v39 = vld [vmem:[%s4694_s3 + $0x128] sm:$0xff]   ;;  %v2800_v58 = vld [vmem:[%s4695_s4] sm:$0xf] }
 0x186   : > { %3558 = vmatprep.subr.bf16.mxu1 %v3885_v47  ;;  %3524 = vmatprep.mubr.bf16.mxu0 %v1462_v36  ;;  %v4458_v52 = vld [vmem:[#allocation3 + $0x72] sm:$0xff]  ;;  %v2814_v7 = vsel %vm535_vm0, %v2800_v58, 0  ;;  %v3906_v62 = vld [vmem:[%s4694_s3 + $0x140] sm:$0xff]  }
 0x187   : > { %v4447_v40 = vld [vmem:[#allocation3 + $0x52] sm:$0xff]  ;;  %3514 = vmatprep.subr.bf16.mxu0 %v3888_v51  ;;  %v2790_v36 = vld [vmem:[#allocation2 + $0x200] sm:$0xff] }
 0x188   : > { %v4454_v42 = vpack.c.bf16 %v4447_v40, %v4411_v60  ;;  %v1459_v19 = vld [vmem:[#allocation3 + $0x50] sm:$0xff]  ;;  %v4510_v27 = vld [vmem:[#allocation3 + $0x80] sm:$0xff]  ;;  %v3917_v59 = vld [vmem:[%s4694_s3 + $0x198] sm:$0xff]  }
 0x189   : > { %3559 = vmatpush3.bf16.msra.mxu1 %v3885_v47  ;;  %v4456_v48 = vld [vmem:[#allocation3 + $0x62] sm:$0xff]  ;;  %3515 = vmatpush3.bf16.msra.mxu0 %v3888_v51  ;;  %v4494_v3 = vpack.c.bf16 %v1459_v19, %v1890_v1  ;;  %v1461_v23 = vld [vmem:[#allocation3 + $0x70] sm:$0xff] }
 0x18a   : > { %3552 = vmatprep.mubr.bf16.mxu1 %v4454_v42  ;;  %3560 = vmatprep.subr.bf16.mxu1 %v3887_v37  ;;  %v4463_v53 = vpack.c.bf16 %v4458_v52, %v4456_v48  ;;  %v2197_v2 = vpack.c.bf16 %v4456_v48, %v4447_v40  ;;  %v1892_v8 = vld [vmem:[#allocation3 + $0x60] sm:$0xff]  ;;  %v1898_v28 = vpack.c.bf16 %v4510_v27, %v1461_v23  ;;  %v2789_v51 = vld [vmem:[#allocation2 + $0x1f0] sm:$0xff]  ;;  %v3921_v48 = vld [vmem:[%s4694_s3 + $0x1b8] sm:$0xff]  }
 0x18b   : > { %3516 = vmatprep.subr.bf16.mxu0 %v3890_v41  ;;  %v1897_v46 = vpack.c.bf16 %v1892_v8, %v1459_v19  ;;  %v4504_v24 = vpack.c.bf16 %v1461_v23, %v1892_v8  ;;  %v2788_v47 = vld [vmem:[#allocation2 + $0x1e0] sm:$0xff]  ;;  %v3920_v40 = vld [vmem:[%s4694_s3 + $0x1b0] sm:$0xff]   ;;  %v2349_v19 = vpack.c.bf16 %v3946_v49, %v4510_v27  ;;  %v3927_v49 = vld [vmem:[%s4694_s3 + $0x1e8] sm:$0xff]  }
 0x18c   : > { %3553 = vmatmul.mubr.bf16.gmra.mrb[4].mxu1 %v4463_v53  ;;  %v3910_v30 = vld [vmem:[%s4694_s3 + $0x160] sm:$0xff]   ;;  %v2495_v8 = vld [vmem:[#allocation3 + $0x91] sm:$0xff] }
 0x18d   : > { %3561 = vmatpush3.bf16.msra.mxu1 %v3887_v37  ;;  %3572 = vmatprep.mubr.bf16.mxu1 %v1895_v55  ;;  %v3907_v37 = vld [vmem:[%s4694_s3 + $0x148] sm:$0xff]   ;;  %v2792_v55 = vld [vmem:[#allocation2 + $0x220] sm:$0xff] }
 0x18e   : > { %3562 = vmatprep.subr.bf16.mxu1 %v3889_v54  ;;  %3517 = vmatpush3.bf16.msra.mxu0 %v3890_v41  ;;  %v2796_v41 = vpack.c.bf16 %v2789_v51, %v2788_v47  ;;  %v3914_v61 = vld [vmem:[%s4694_s3 + $0x180] sm:$0xff]  }
 0x18f   : > { %3518 = vmatprep.subr.bf16.mxu0 %v3892_v57  ;;  %v3918_v60 = vld [vmem:[%s4694_s3 + $0x1a0] sm:$0xff]  }
 0x190   : > { %v3926_v21 = vld [vmem:[%s4694_s3 + $0x1e0] sm:$0xff]  }
 0x191   : > { %3563 = vmatpush3.bf16.msra.mxu1 %v3889_v54  ;;  %v2797_v54 = vpack.c.bf16 %v2791_v43, %v2790_v36  ;;  %v3930_v1 = vld [vmem:[%s4694_s3 + $0x200] sm:$0xff]  }
 0x192   : > { %3564 = vmatprep.subr.bf16.mxu1 %v3891_v13  ;;  %3519 = vmatpush3.bf16.msra.mxu0 %v3892_v57  ;;  %v2793_v57 = vld [vmem:[#allocation2 + $0x230] sm:$0xff]  ;;  %v3232_v43 = vld [vmem:[%s4696_s5] ss:$0 sm:$0xff] }
 0x193   : > { %3520 = vmatprep.subr.bf16.mxu0 %v3894_v14 }
 0x195   : > { %3565 = vmatpush3.bf16.msra.mxu1 %v3891_v13  ;;  %v3908_v13 = vld [vmem:[%s4694_s3 + $0x150] sm:$0xff]  }
 0x196   : > { %3566 = vmatprep.subr.bf16.mxu1 %v3893_v15  ;;  %3521 = vmatpush3.bf16.msra.mxu0 %v3894_v14  ;;  %v2798_v14 = vpack.c.bf16 %v2793_v57, %v2792_v55 }
 0x197   : > { %3522 = vmatprep.subr.bf16.mxu0 %v3896_v17 }
 0x199   : > { %3567 = vmatpush3.bf16.msra.mxu1 %v3893_v15  ;;  %v2794_v15 = vld [vmem:[#allocation2 + $0x240] sm:$0xff] }
 0x19a   : > { %3568 = vmatprep.subr.bf16.mxu1 %v3895_v18  ;;  %3523 = vmatpush3.bf16.msra.mxu0 %v3896_v17 }
 0x19b   : > { %3855 = vmatprep.subr.msk.bf16.mxu0 %vm535_vm0, %v2800_v58 }
 0x19d   : > { %3569 = vmatpush3.bf16.msra.mxu1 %v3895_v18  ;;  %3525 = vmatmul.mubr.bf16.vlgmr.msra.gmra.mrb[8].mxu0 %v4492_v44  ;;  %v3924_v18 = vld [vmem:[%s4694_s3 + $0x1d0] sm:$0xff]  }
 0x19e   : > { %3570 = vmatprep.subr.bf16.mxu1 %v3897_v20  ;;  %3528 = vmatprep.mubr.bf16.mxu0 %v4494_v3 }
 0x19f   : > { %3701 = vmatpush3.bf16.msra.mxu0 %v2814_v7 }
 0x1a1   : > { %3571 = vmatpush3.bf16.msra.mxu1 %v3897_v20  ;;  %v3925_v20 = vld [vmem:[%s4694_s3 + $0x1d8] sm:$0xff]  }
 0x1a2   : > { %3580 = vmatprep.subr.bf16.mxu1 %v3898_v5 }
 0x1a4   : > { %3573 = vmatmul.mubr.bf16.vlgmr.msra.gmra.mrb[0].mxu1 %v1896_v10  ;;  %v2499_v10 = vpack.c.bf16 %v2495_v8, %v4394_v32  ;;  %v3935_v32 = vld [vmem:[%s4694_s3 + $0x228] sm:$0xff]  }
 0x1a5   : > { %3576 = vmatprep.mubr.bf16.mxu1 %v1897_v46  ;;  %3581 = vmatpush3.bf16.msra.mxu1 %v3898_v5  ;;  %v3932_v5 = vld [vmem:[%s4694_s3 + $0x210] sm:$0xff]  }
 0x1a6   : > { %3582 = vmatprep.subr.bf16.mxu1 %v3899_v12  ;;  %3529 = vmatmul.mubr.bf16.gmra.mrb[12].mxu0 %v4504_v24  ;;  %v2645_v46 = vld [vmem:[#allocation3 + $0x92] sm:$0xff] }
 0x1a7   : > { %3702 = vmatprep.mubr.msk.bf16.mxu0 %vm413_vm1, %v2796_v41 }
 0x1a9   : > { %3583 = vmatpush3.bf16.msra.mxu1 %v3899_v12  ;;  %v3933_v12 = vld [vmem:[%s4694_s3 + $0x218] sm:$0xff]  }
 0x1aa   : > { %3584 = vmatprep.subr.bf16.mxu1 %v3900_v25 }
 0x1ac   : > { %3577 = vmatmul.mubr.bf16.gmra.mrb[4].mxu1 %v1898_v28 }
 0x1ad   : > { %3585 = vmatpush3.bf16.msra.mxu1 %v3900_v25  ;;  %3596 = vmatprep.mubr.bf16.mxu1 %v2045_v16  ;;  %v3905_v16 = vld [vmem:[%s4694_s3 + $0x138] sm:$0xff]  }
 0x1ae   : > { %3586 = vmatprep.subr.bf16.mxu1 %v3901_v29  ;;  %3703 = vmatmul.mubr.msk.bf16.vlgmr.msra.gmra.mrb[16].mxu0 %vm413_vm1, %v2797_v54 }
 0x1af   : > { %3706 = vmatprep.mubr.msk.bf16.mxu0 %vm413_vm1, %v2798_v14 }
 0x1b1   : > { %3587 = vmatpush3.bf16.msra.mxu1 %v3901_v29 }
 0x1b2   : > { %3588 = vmatprep.subr.bf16.mxu1 %v3902_v31 }
 0x1b5   : > { %3589 = vmatpush3.bf16.msra.mxu1 %v3902_v31 }
 0x1b6   : > { %3590 = vmatprep.subr.bf16.mxu1 %v3903_v39 }
 0x1b9   : > { %3591 = vmatpush3.bf16.msra.mxu1 %v3903_v39 }
 0x1ba   : > { %3592 = vmatprep.subr.bf16.mxu1 %v3904_v4 }
 0x1bd   : > { %3593 = vmatpush3.bf16.msra.mxu1 %v3904_v4 }
 0x1be   : > { %3594 = vmatprep.subr.bf16.mxu1 %v3905_v16 }
 0x1c1   : > { %3595 = vmatpush3.bf16.msra.mxu1 %v3905_v16 }
 0x1c2   : > { %3604 = vmatprep.subr.bf16.mxu1 %v3906_v62 }
 0x1c4   : > { %3597 = vmatmul.mubr.bf16.vlgmr.msra.gmra.mrb[0].mxu1 %v2046_v9  ;;  %v2799_v9 = vpack.c.bf16 %v2795_v22, %v2794_v15 }
 0x1c5   : > { %3600 = vmatprep.mubr.bf16.mxu1 %v2047_v33  ;;  %3605 = vmatpush3.bf16.msra.mxu1 %v3906_v62  ;;  %v3916_v33 = vld [vmem:[%s4694_s3 + $0x190] sm:$0xff]  }
 0x1c6   : > { %3606 = vmatprep.subr.bf16.mxu1 %v3907_v37  ;;  %3707 = vmatmul.mubr.msk.bf16.gmra.mrb[20].mxu0 %vm413_vm1, %v2799_v9 }
 0x1c9   : > { %3607 = vmatpush3.bf16.msra.mxu1 %v3907_v37 }
 0x1ca   : > { %3608 = vmatprep.subr.bf16.mxu1 %v3908_v13 }
 0x1cc   : > { %3601 = vmatmul.mubr.bf16.gmra.mrb[4].mxu1 %v2048_v63  ;;  %v3915_v63 = vld [vmem:[%s4694_s3 + $0x188] sm:$0xff]  }
 0x1cd   : > { %3609 = vmatpush3.bf16.msra.mxu1 %v3908_v13  ;;  %3620 = vmatprep.mubr.bf16.mxu1 %v2195_v35  ;;  %v4591_v35 = vld [vmem:[#allocation3 + $0x82] sm:$0xff] }
 0x1ce   : > { %3610 = vmatprep.subr.bf16.mxu1 %v3909_v6  ;;  %v2198_v17 = vpack.c.bf16 %v4591_v35, %v4458_v52  ;;  %v3922_v52 = vld [vmem:[%s4694_s3 + $0x1c0] sm:$0xff]   ;;  %v2649_v23 = vpack.c.bf16 %v2645_v46, %v4591_v35 }
 0x1d1   : > { %3611 = vmatpush3.bf16.msra.mxu1 %v3909_v6 }
 0x1d2   : > { %3612 = vmatprep.subr.bf16.mxu1 %v3910_v30 }
 0x1d5   : > { %3613 = vmatpush3.bf16.msra.mxu1 %v3910_v30 }
 0x1d6   : > { %3614 = vmatprep.subr.bf16.mxu1 %v3911_v56 }
 0x1d9   : > { %3615 = vmatpush3.bf16.msra.mxu1 %v3911_v56 }
 0x1da   : > { %3616 = vmatprep.subr.bf16.mxu1 %v3912_v26 }
 0x1dd   : > { %3617 = vmatpush3.bf16.msra.mxu1 %v3912_v26 }
 0x1de   : > { %3618 = vmatprep.subr.bf16.mxu1 %v3913_v34 }
 0x1e1   : > { %3619 = vmatpush3.bf16.msra.mxu1 %v3913_v34 }
 0x1e2   : > { %3628 = vmatprep.subr.bf16.mxu1 %v3914_v61 }
 0x1e4   : > { %3621 = vmatmul.mubr.bf16.vlgmr.msra.gmra.mrb[0].mxu1 %v2196_v0  ;;  %v3919_v0 = vld [vmem:[%s4694_s3 + $0x1a8] sm:$0xff]  }
 0x1e5   : > { %3624 = vmatprep.mubr.bf16.mxu1 %v2197_v2  ;;  %3629 = vmatpush3.bf16.msra.mxu1 %v3914_v61  ;;  %v3923_v2 = vld [vmem:[%s4694_s3 + $0x1c8] sm:$0xff]  }
 0x1e6   : > { %3630 = vmatprep.subr.bf16.mxu1 %v3915_v63 }
 0x1e9   : > { %3631 = vmatpush3.bf16.msra.mxu1 %v3915_v63 }
 0x1ea   : > { %3632 = vmatprep.subr.bf16.mxu1 %v3916_v33 }
 0x1ec   : > { %3625 = vmatmul.mubr.bf16.gmra.mrb[4].mxu1 %v2198_v17 }
 0x1ed   : > { %3633 = vmatpush3.bf16.msra.mxu1 %v3916_v33  ;;  %3644 = vmatprep.mubr.bf16.mxu1 %v4492_v44  ;;  %v3928_v44 = vld [vmem:[%s4694_s3 + $0x1f0] sm:$0xff]  }
 0x1ee   : > { %3634 = vmatprep.subr.bf16.mxu1 %v3917_v59 }
 0x1f1   : > { %3635 = vmatpush3.bf16.msra.mxu1 %v3917_v59 }
 0x1f2   : > { %3636 = vmatprep.subr.bf16.mxu1 %v3918_v60 }
 0x1f5   : > { %3637 = vmatpush3.bf16.msra.mxu1 %v3918_v60 }
 0x1f6   : > { %3638 = vmatprep.subr.bf16.mxu1 %v3919_v0 }
 0x1f9   : > { %3639 = vmatpush3.bf16.msra.mxu1 %v3919_v0 }
 0x1fa   : > { %3640 = vmatprep.subr.bf16.mxu1 %v3920_v40 }
 0x1fd   : > { %3641 = vmatpush3.bf16.msra.mxu1 %v3920_v40 }
 0x1fe   : > { %3642 = vmatprep.subr.bf16.mxu1 %v3921_v48 }
 0x201   : > { %3643 = vmatpush3.bf16.msra.mxu1 %v3921_v48 }
 0x202   : > { %3652 = vmatprep.subr.bf16.mxu1 %v3922_v52 }
 0x204   : > { %3645 = vmatmul.mubr.bf16.vlgmr.msra.gmra.mrb[0].mxu1 %v4494_v3  ;;  %v3931_v3 = vld [vmem:[%s4694_s3 + $0x208] sm:$0xff]  }
 0x205   : > { %3648 = vmatprep.mubr.bf16.mxu1 %v4504_v24  ;;  %3653 = vmatpush3.bf16.msra.mxu1 %v3922_v52 }
 0x206   : > { %3654 = vmatprep.subr.bf16.mxu1 %v3923_v2 }
 0x209   : > { %3655 = vmatpush3.bf16.msra.mxu1 %v3923_v2 }
 0x20a   : > { %3656 = vmatprep.subr.bf16.mxu1 %v3924_v18 }
 0x20c   : > { %3649 = vmatmul.mubr.bf16.gmra.mrb[4].mxu1 %v2349_v19 }
 0x20d   : > { %3657 = vmatpush3.bf16.msra.mxu1 %v3924_v18  ;;  %3668 = vmatprep.mubr.bf16.mxu1 %v4381_v11  ;;  %v3929_v11 = vld [vmem:[%s4694_s3 + $0x1f8] sm:$0xff]  }
 0x20e   : > { %3658 = vmatprep.subr.bf16.mxu1 %v3925_v20 }
 0x211   : > { %3659 = vmatpush3.bf16.msra.mxu1 %v3925_v20 }
 0x212   : > { %3660 = vmatprep.subr.bf16.mxu1 %v3926_v21 }
 0x215   : > { %3661 = vmatpush3.bf16.msra.mxu1 %v3926_v21 }
 0x216   : > { %3662 = vmatprep.subr.bf16.mxu1 %v3927_v49 }
 0x219   : > { %3663 = vmatpush3.bf16.msra.mxu1 %v3927_v49 }
 0x21a   : > { %3664 = vmatprep.subr.bf16.mxu1 %v3928_v44 }
 0x21d   : > { %3665 = vmatpush3.bf16.msra.mxu1 %v3928_v44 }
 0x21e   : > { %3666 = vmatprep.subr.bf16.mxu1 %v3929_v11 }
 0x221   : > { %3667 = vmatpush3.bf16.msra.mxu1 %v3929_v11 }
 0x222   : > { %3676 = vmatprep.subr.bf16.mxu1 %v3930_v1 }
 0x224   : > { %3669 = vmatmul.mubr.bf16.vlgmr.msra.gmra.mrb[0].mxu1 %v4409_v38  ;;  %v3934_v38 = vld [vmem:[%s4694_s3 + $0x220] sm:$0xff]  }
 0x225   : > { %3672 = vmatprep.mubr.bf16.mxu1 %v4431_v50  ;;  %3677 = vmatpush3.bf16.msra.mxu1 %v3930_v1  ;;  %v3936_v50 = vld [vmem:[%s4694_s3 + $0x230] sm:$0xff]  }
 0x226   : > { %3678 = vmatprep.subr.bf16.mxu1 %v3931_v3 }
 0x229   : > { %3679 = vmatpush3.bf16.msra.mxu1 %v3931_v3 }
 0x22a   : > { %3680 = vmatprep.subr.bf16.mxu1 %v3932_v5 }
 0x22c   : > { %3673 = vmatmul.mubr.bf16.gmra.mrb[4].mxu1 %v2499_v10 }
 0x22d   : > { %3681 = vmatpush3.bf16.msra.mxu1 %v3932_v5  ;;  %3692 = vmatprep.mubr.bf16.mxu1 %v4423_v45  ;;  %v3937_v45 = vld [vmem:[%s4694_s3 + $0x238] sm:$0xff]  }
 0x22e   : > { %3682 = vmatprep.subr.bf16.mxu1 %v3933_v12 }
 0x231   : > { %3683 = vmatpush3.bf16.msra.mxu1 %v3933_v12 }
 0x232   : > { %3684 = vmatprep.subr.bf16.mxu1 %v3934_v38 }
 0x235   : > { %3685 = vmatpush3.bf16.msra.mxu1 %v3934_v38 }
 0x236   : > { %3686 = vmatprep.subr.bf16.mxu1 %v3935_v32 }
 0x239   : > { %3687 = vmatpush3.bf16.msra.mxu1 %v3935_v32 }
 0x23a   : > { %3688 = vmatprep.subr.bf16.mxu1 %v3936_v50 }
 0x23d   : > { %3689 = vmatpush3.bf16.msra.mxu1 %v3936_v50 }
 0x23e   : > { %3690 = vmatprep.subr.bf16.mxu1 %v3937_v45 }
 0x241   : > { %3691 = vmatpush3.bf16.msra.mxu1 %v3937_v45 }
 0x244   : > { %3693 = vmatmul.mubr.bf16.vlgmr.msra.gmra.mrb[0].mxu1 %v4454_v42 }
 0x245   : > { %3696 = vmatprep.mubr.bf16.mxu1 %v4463_v53 }
 0x24c   : > { %3697 = vmatmul.mubr.bf16.gmra.mrb[4].mxu1 %v2649_v23 }
 0x270   : > { %v3526_v24 = vpop.f32.mrb[8].mxu0 }
 0x271   : > { %v1706_v25 = vpop.f32.mrb[9].mxu0 }
 0x272   : > { %v3527_v27 = vpop.f32.mrb[10].mxu0 }
 0x273   : > { %v1709_v28 = vpop.f32.mrb[11].mxu0 }
 0x279   : > { %v3530_v29 = vpop.f32.mrb[12].mxu0 }
 0x27a   : > { %v1722_v31 = vpop.f32.mrb[13].mxu0 }
 0x27b   : > { %v3531_v39 = vpop.f32.mrb[14].mxu0 }
 0x27c   : > { %v1725_v58 = vpop.f32.mrb[15].mxu0 }
 0x281   : > { %v3704_v4 = vpop.f32.mrb[16].mxu0 }
 0x282   : > { %v2850_v7 = vpop.f32.mrb[17].mxu0 }
 0x283   : > { %v3705_v16 = vpop.f32.mrb[18].mxu0 }
 0x284   : > { %v2853_v62 = vpop.f32.mrb[19].mxu0 }
 0x299   : > { %v3708_v42 = vpop.f32.mrb[20].mxu0 }
 0x29a   : > { %v2866_v47 = vpop.f32.mrb[21].mxu0 }
 0x29b   : > { %v3709_v53 = vpop.f32.mrb[22].mxu0 }
 0x29c   : > { %v2869_v51 = vpop.f32.mrb[23].mxu0 }
 0x317   : > { %v3694_v36 = vpop.f32.mrb[0].mxu1 }
 0x318   : > { %v3710_v37 = vadd.f32 %v3694_v36, %v3526_v24  ;;  %v2749_v41 = vpop.f32.mrb[1].mxu1 }
 0x319   : > { %v3712_v54 = vadd.f32 %v2749_v41, %v1706_v25  ;;  %v3695_v55 = vpop.f32.mrb[2].mxu1 }
 0x31a   : > { %v3711_v57 = vadd.f32 %v3710_v37, %v3704_v4  ;;  %v3714_v13 = vadd.f32 %v3695_v55, %v3527_v27  ;;  %v2752_v14 = vpop.f32.mrb[3].mxu1 }
 0x31b   : > { %v3713_v15 = vadd.f32 %v3712_v54, %v2850_v7  ;;  %v3716_v22 = vadd.f32 %v2752_v14, %v1709_v28 }
 0x31c   : > { %v2898_v6 = vadd.f32 %v3711_v57, %v3232_v43  ;;  %v3715_v9 = vadd.f32 %v3714_v13, %v3705_v16 }
 0x31d   : > { %v2896_v30 = vadd.f32 %v3713_v15, %v3232_v43  ;;  %v3717_v56 = vadd.f32 %v3716_v22, %v2853_v62 }
 0x31e   : > { %v2906_v26 = vmax.f32 %v2898_v6, 0.0  ;;  %v2899_v34 = vadd.f32 %v3715_v9, %v3232_v43 }
 0x31f   : > { %v2904_v61 = vmax.f32 %v2896_v30, 0.0  ;;  %v2897_v63 = vadd.f32 %v3717_v56, %v3232_v43  ;;  %v3698_v33 = vpop.f32.mrb[4].mxu1 }
 0x320   : > { %2914 = vst [vmem:[%s4678_s20 + $0x10] sm:$0xff] %v2906_v26  ;;  %v2907_v35 = vmax.f32 %v2899_v34, 0.0  ;;  %v3718_v17 = vadd.f32 %v3698_v33, %v3530_v29  ;;  %v2765_v59 = vpop.f32.mrb[5].mxu1 }
 0x321   : > { %2912 = vst [vmem:[%s4678_s20] sm:$0xff] %v2904_v61  ;;  %v2905_v60 = vmax.f32 %v2897_v63, 0.0  ;;  %v3720_v0 = vadd.f32 %v2765_v59, %v1722_v31  ;;  %v3699_v40 = vpop.f32.mrb[6].mxu1 }
 0x322   : > { %2915 = vst [vmem:[%s4678_s20 + $0x18] sm:$0xff] %v2907_v35  ;;  %v3719_v48 = vadd.f32 %v3718_v17, %v3708_v42  ;;  %v3722_v52 = vadd.f32 %v3699_v40, %v3531_v39  ;;  %v2768_v2 = vpop.f32.mrb[7].mxu1 }
 0x323   : > { %2913 = vst [vmem:[%s4678_s20 + $0x8] sm:$0xff] %v2905_v60  ;;  %v3721_v18 = vadd.f32 %v3720_v0, %v2866_v47  ;;  %v3724_v19 = vadd.f32 %v2768_v2, %v1725_v58 }
 0x324   : > { %v2902_v20 = vadd.f32 %v3719_v48, %v3232_v43  ;;  %v3723_v21 = vadd.f32 %v3722_v52, %v3709_v53 }
 0x325   : > { %v2900_v49 = vadd.f32 %v3721_v18, %v3232_v43  ;;  %v3725_v44 = vadd.f32 %v3724_v19, %v2869_v51 }
 0x326   : > { %v2910_v11 = vmax.f32 %v2902_v20, 0.0  ;;  %v2903_v1 = vadd.f32 %v3723_v21, %v3232_v43 }
 0x327   : > { %v2908_v3 = vmax.f32 %v2900_v49, 0.0  ;;  %v2901_v5 = vadd.f32 %v3725_v44, %v3232_v43 }
 0x328   : > { %2918 = vst [vmem:[%s4678_s20 + $0x30] sm:$0xff] %v2910_v11  ;;  %v2911_v8 = vmax.f32 %v2903_v1, 0.0 }
 0x329   : > { %2916 = vst [vmem:[%s4678_s20 + $0x20] sm:$0xff] %v2908_v3  ;;  %v2909_v10 = vmax.f32 %v2901_v5, 0.0 }
 0x32a   : > { %2919 = vst [vmem:[%s4678_s20 + $0x38] sm:$0xff] %v2911_v8 }
 0x32b   : > { %2917 = vst [vmem:[%s4678_s20 + $0x28] sm:$0xff] %v2909_v10 }
 0x32c PF: > { %s16_s21 = sadd.s32 1, %s3944_s21  }
 0x32d   : > { %p13_p4 = scmp.ge.s32.totalorder %s16_s21, 4  }
 0x32f   :  { %15 = sbr.rel (!%p13_p4) target bundleno = 1 (0x1), region = 97 }

</bundles_post_ra>
